<compile_context>
chip_gen: v6e
topology: v6e:2x2x1
jax: 0.10.0
libtpu: 0.0.40
codegen_flags: <defaults>
</compile_context>

<pallas_src>
import math
import functools

import jax
import jax.numpy as jnp
from jax.experimental import pallas as pl
from jax.experimental.pallas import tpu as pltpu


# ----------------------------------------------------------------------------
# in-kernel helpers (jnp on loaded tiles; traced once)
# ----------------------------------------------------------------------------
def _layernorm(x, w, b, eps=1e-5):
    mu = jnp.mean(x, axis=-1, keepdims=True)
    var = jnp.mean((x - mu) ** 2, axis=-1, keepdims=True)
    return (x - mu) * jax.lax.rsqrt(var + eps) * w + b


def _gelu_tanh(x):
    # TODO(synk): nn.GELU default is the exact erf form; tanh approximation is
    # used here (erf lowering is not guaranteed inside Mosaic).
    return 0.5 * x * (1.0 + jnp.tanh(0.7978845608028654 * (x + 0.044715 * x * x * x)))


def _sparsemax_rows(logits):
    """Row-wise sparsemax over the last axis, vectorized over all rows.

    Sort-free exact formulation; (B, N, N) intermediate.
    TODO(synk): at production sd_num (N >= 512) process B in row-blocks and/or
    push the >=-count/sum reductions to MXU dots to bound the N^2 intermediate
    (it would otherwise dominate VMEM on v7x's 64 MiB).
    """
    z = logits - jnp.max(logits, axis=-1, keepdims=True)          # (B, N)
    zi = z[:, :, None]                                            # (B, N, 1)
    zk = z[:, None, :]                                            # (B, 1, N)
    ge = (zk >= zi).astype(jnp.float32)                           # (B, N, N)
    c = jnp.sum(ge, axis=-1)                                      # (B, N)
    s = jnp.sum(ge * zk, axis=-1)                                 # (B, N)
    supp = ((1.0 + c * z) > s).astype(jnp.float32)                # (B, N)
    k = jnp.sum(supp, axis=-1, keepdims=True)                     # (B, 1)
    tau = (jnp.sum(z * supp, axis=-1, keepdims=True) - 1.0) / k   # (B, 1)
    return jnp.maximum(z - tau, 0.0)                              # (B, N)


def _query_pool_one_batch(ft, keep_row, sd,
                          ln1_w, ln1_b, w1, b1, ln2_w, ln2_b, w2, b2,
                          mxu_dtype):
    """Query_model MLP + token pooling for ONE batch element.

    ft:       (T, F)   feature slab (possibly bf16 from the wrapper)
    keep_row: (1, T)   keep-mask with 1/T, 1/sqrt(att_dim), 1/temperature folded in
    returns   (1, N)   pooled, scaled attention logits
    """
    def mm(a, bmat):
        return jnp.dot(a.astype(mxu_dtype), bmat.astype(mxu_dtype),
                       preferred_element_type=jnp.float32)

    x = ft.astype(jnp.float32)                                     # elementwise in f32
    xn = _layernorm(x, ln1_w, ln1_b)                               # (T, F)
    h = mm(xn, w1) + b1                                            # (T, D)
    h = _gelu_tanh(h)
    hn = _layernorm(h, ln2_w, ln2_b)                               # (T, D)
    q = mm(hn, w2) + b2                                            # (T, D)

    inner = jax.lax.dot_general(q.astype(mxu_dtype), sd.astype(mxu_dtype),
                                (((1,), (1,)), ((), ())),
                                preferred_element_type=jnp.float32)  # (T, N)

    # mask + mean pooling (+ all scalar scalings, folded in the wrapper) as one
    # tiny (1,T)@(T,N) contraction — no block-diagonal pooling matmul.
    pooled = jnp.dot(keep_row, inner, preferred_element_type=jnp.float32)  # (1, N)
    return pooled


# ----------------------------------------------------------------------------
# fused SST_network kernel (grid over batch)
# ----------------------------------------------------------------------------
def _sst_kernel(ftv_ref, keepv_ref, ftt_ref, keept_ref, sd_ref,
                vln1w_ref, vln1b_ref, vw1_ref, vb1_ref,
                vln2w_ref, vln2b_ref, vw2_ref, vb2_ref,
                tln1w_ref, tln1b_ref, tw1_ref, tb1_ref,
                tln2w_ref, tln2b_ref, tw2_ref, tb2_ref,
                scale_ref,
                lv_ref, loss_ref,
                pv_acc, pt_acc,
                *, mxu_dtype):
    b = pl.program_id(0)
    nb = pl.num_programs(0)
    sd = sd_ref[...]                                               # (N, D), resident

    pv = _query_pool_one_batch(
        ftv_ref[0], keepv_ref[pl.ds(b, 1), :], sd,
        vln1w_ref[...], vln1b_ref[...], vw1_ref[...], vb1_ref[...],
        vln2w_ref[...], vln2b_ref[...], vw2_ref[...], vb2_ref[...], mxu_dtype)
    pt = _query_pool_one_batch(
        ftt_ref[0], keept_ref[pl.ds(b, 1), :], sd,
        tln1w_ref[...], tln1b_ref[...], tw1_ref[...], tb1_ref[...],
        tln2w_ref[...], tln2b_ref[...], tw2_ref[...], tb2_ref[...], mxu_dtype)

    pv_acc[pl.ds(b, 1), :] = pv                                    # (1, N) into (B, N) scratch
    pt_acc[pl.ds(b, 1), :] = pt

    @pl.when(b == nb - 1)
    def _finalize():
        def head(pooled):
            att_w = _sparsemax_rows(pooled)                        # (B, N), f32
            att_ft = jnp.dot(att_w.astype(mxu_dtype), sd.astype(mxu_dtype),
                             preferred_element_type=jnp.float32)   # (B, D)
            norm = jnp.sqrt(jnp.sum(att_ft * att_ft, axis=-1, keepdims=True)) + 1e-10
            return att_ft / norm

        v_n = head(pv_acc[...])                                    # (B, D)
        t_n = head(pt_acc[...])                                    # (B, D)

        scale = scale_ref[...]                                     # (1, 1)
        lv = jax.lax.dot_general(v_n.astype(mxu_dtype), t_n.astype(mxu_dtype),
                                 (((1,), (1,)), ((), ())),
                                 preferred_element_type=jnp.float32) * scale  # (B, B)
        lv_ref[...] = lv

        # TODO(synk): ClipInfoCELoss source not provided; standard symmetric
        # CLIP InfoNCE with labels = arange(B). The text-direction CE uses
        # column reductions of lv (== rows of lv^T), so no in-kernel transpose.
        Bn = lv.shape[0]
        eye = (jax.lax.broadcasted_iota(jnp.int32, (Bn, Bn), 0) ==
               jax.lax.broadcasted_iota(jnp.int32, (Bn, Bn), 1)).astype(jnp.float32)

        diag_r = jnp.sum(lv * eye, axis=-1, keepdims=True)                         # (B, 1)
        m_r = jnp.max(lv, axis=-1, keepdims=True)
        lse_r = jnp.log(jnp.sum(jnp.exp(lv - m_r), axis=-1, keepdims=True)) + m_r  # (B, 1)

        diag_c = jnp.sum(lv * eye, axis=0, keepdims=True)                          # (1, B)
        m_c = jnp.max(lv, axis=0, keepdims=True)
        lse_c = jnp.log(jnp.sum(jnp.exp(lv - m_c), axis=0, keepdims=True)) + m_c   # (1, B)

        loss11 = 0.5 * (jnp.sum(lse_r - diag_r, axis=0, keepdims=True) +
                        jnp.sum(lse_c - diag_c, axis=1, keepdims=True)) * (1.0 / Bn)
        loss_ref[...] = loss11                                                     # (1, 1)


# ----------------------------------------------------------------------------
# wrapper
# ----------------------------------------------------------------------------
def sst_network_forward(video_feature, text_feature, space_dict,
                        video_params, text_params, logit_scale,
                        video_pad_mask=None, text_pad_mask=None, *,
                        sd_temperature=0.07, mxu_dtype=None):
    B, Tv, Fv = video_feature.shape
    Bt, Tt, Ft = text_feature.shape
    assert Bt == B
    N, D = space_dict.shape

    # bf16 MXU operands once dims are MXU-native; f32 at toy dims (reference
    # numerics). TODO(synk): fp8 weights are an option on v7x if accuracy allows.
    if mxu_dtype is None:
        mxu_dtype = jnp.bfloat16 if min(Fv, Ft, D, N) >= 128 else jnp.float32

    # fold 1/sqrt(att_dim), 1/temperature and the mean's 1/T (torch .mean(1)
    # divides by the full token count, matching the reference) into the mask.
    inv_scale = 1.0 / (math.sqrt(float(D)) * float(sd_temperature))

    def keep_mat(mask, T):
        if mask is None:
            keep = jnp.ones((B, T), jnp.float32)
        else:
            keep = (mask == 0).astype(jnp.float32)
        return keep * (inv_scale / float(T))

    keepv = keep_mat(video_pad_mask, Tv)                            # (B, Tv)
    keept = keep_mat(text_pad_mask, Tt)                             # (B, Tt)

    # pre-cast the big MXU operands in the wrapper (halves DMA bytes in bf16);
    # LN params / biases / masks stay f32 (elementwise math is f32 in-kernel).
    ftv = video_feature.astype(mxu_dtype)                           # (B, Tv, Fv)
    ftt = text_feature.astype(mxu_dtype)                            # (B, Tt, Ft)
    sd_mxu = space_dict.astype(mxu_dtype)                           # (N, D)

    def cast_w(p):
        q = dict(p)
        q["w1"] = p["w1"].astype(mxu_dtype)
        q["w2"] = p["w2"].astype(mxu_dtype)
        return q

    vp = cast_w(video_params)
    tp = cast_w(text_params)

    # logit_scale.exp() clamped at 100 (matches the torch forward)
    scale = jnp.minimum(jnp.exp(logit_scale.reshape(())), 100.0)
    scale = scale.reshape(1, 1).astype(jnp.float32)

    kern = functools.partial(_sst_kernel, mxu_dtype=mxu_dtype)

    def per_batch(shape):
        # one batch element per grid step (pipelined / double-buffered by Pallas)
        return pl.BlockSpec(shape, lambda b: (b, 0, 0))

    def resident(arr):
        # full-array block with constant index -> DMA'd once, stays in VMEM
        nd = arr.ndim
        return pl.BlockSpec(arr.shape, lambda b, _n=nd: (0,) * _n)

    in_specs = [
        per_batch((1, Tv, Fv)),          # ftv
        resident(keepv),                 # keepv (tiny, resident; row b sliced in-kernel)
        per_batch((1, Tt, Ft)),          # ftt
        resident(keept),                 # keept
        resident(sd_mxu),                # space_dict
        resident(vp["ln1_w"]), resident(vp["ln1_b"]),
        resident(vp["w1"]), resident(vp["b1"]),
        resident(vp["ln2_w"]), resident(vp["ln2_b"]),
        resident(vp["w2"]), resident(vp["b2"]),
        resident(tp["ln1_w"]), resident(tp["ln1_b"]),
        resident(tp["w1"]), resident(tp["b1"]),
        resident(tp["ln2_w"]), resident(tp["ln2_b"]),
        resident(tp["w2"]), resident(tp["b2"]),
        resident(scale),                 # (1, 1)
    ]
    out_specs = [
        pl.BlockSpec((B, B), lambda b: (0, 0)),   # logits_per_video (written at last step)
        pl.BlockSpec((1, 1), lambda b: (0, 0)),   # loss
    ]

    # TODO(synk): on v7x split the batch axis across both TensorCores (the two
    # Query_model branches are independent until the tiny final logits matmul);
    # the carried pooled-accumulator makes this single axis "arbitrary" here.
    lv, loss = pl.pallas_call(
        kern,
        grid=(B,),
        out_shape=[jax.ShapeDtypeStruct((B, B), jnp.float32),
                   jax.ShapeDtypeStruct((1, 1), jnp.float32)],
        in_specs=in_specs,
        out_specs=out_specs,
        scratch_shapes=[pltpu.VMEM((B, N), jnp.float32),   # pooled video logits
                        pltpu.VMEM((B, N), jnp.float32)],  # pooled text logits
        compiler_params=pltpu.CompilerParams(
            dimension_semantics=("arbitrary",),
            # well above the toy footprint; raise (and re-check the per-step
            # block footprint vs v7x's 64 MiB physical VMEM) at production dims
            vmem_limit_bytes=32 * 1024 * 1024),
    )(ftv, keepv, ftt, keept, sd_mxu,
      vp["ln1_w"], vp["ln1_b"], vp["w1"], vp["b1"],
      vp["ln2_w"], vp["ln2_b"], vp["w2"], vp["b2"],
      tp["ln1_w"], tp["ln1_b"], tp["w1"], tp["b1"],
      tp["ln2_w"], tp["ln2_b"], tp["w2"], tp["b2"],
      scale)

    logits_v = lv
    logits_t = lv.T   # exact: (v @ t^T * s)^T == t @ v^T * s

    return {
        "logits_per_video_sd": logits_v,
        "logits_per_text_sd": logits_t,
        "video_k": space_dict,
        "text_k": space_dict,
        "SST_loss": loss[0, 0],
    }


# ----------------------------------------------------------------------------
if __name__ == "__main__":
    key = jax.random.PRNGKey(0)
    B, Tv, Tt = 4, 8, 8
    video_dim, text_dim = 32, 48
    sd_num, sd_dim = 16, 32

    ks = jax.random.split(key, 8)

    def make_qm_params(k, ft_dim):
        k1, k2, k3, k4 = jax.random.split(k, 4)
        return dict(
            ln1_w=jnp.ones((1, ft_dim), jnp.float32),
            ln1_b=jnp.zeros((1, ft_dim), jnp.float32),
            w1=0.02 * jax.random.normal(k1, (ft_dim, sd_dim), jnp.float32),
            b1=0.01 * jax.random.normal(k2, (1, sd_dim), jnp.float32),
            ln2_w=jnp.ones((1, sd_dim), jnp.float32),
            ln2_b=jnp.zeros((1, sd_dim), jnp.float32),
            w2=0.02 * jax.random.normal(k3, (sd_dim, sd_dim), jnp.float32),
            b2=0.01 * jax.random.normal(k4, (1, sd_dim), jnp.float32),
        )

    space_dict = jax.random.normal(ks[0], (sd_num, sd_dim), jnp.float32)
    video_params = make_qm_params(ks[1], video_dim)
    text_params = make_qm_params(ks[2], text_dim)

    video_feature = jax.random.normal(ks[3], (B, Tv, video_dim), jnp.float32)
    text_feature = jax.random.normal(ks[4], (B, Tt, text_dim), jnp.float32)
    video_pad_mask = jnp.zeros((B, Tv), jnp.float32).at[:, -2:].set(1.0)
    text_pad_mask = jnp.zeros((B, Tt), jnp.float32).at[:, -1:].set(1.0)

    logit_scale = jnp.full((1,), math.log(1.0 / 0.07), jnp.float32)

    out = sst_network_forward(video_feature, text_feature, space_dict,
                              video_params, text_params, logit_scale,
                              video_pad_mask, text_pad_mask,
                              sd_temperature=0.07)
    out = jax.tree_util.tree_map(jax.block_until_ready, out)

    assert out["logits_per_video_sd"].shape == (B, B)
    assert out["logits_per_text_sd"].shape == (B, B)
    assert out["SST_loss"].shape == ()
    assert bool(jnp.all(jnp.isfinite(out["logits_per_video_sd"])))
    assert bool(jnp.isfinite(out["SST_loss"]))
    print("KERNEL_OK")
</pallas_src>

<mosaic_0001>
module attributes {stable_mosaic.version = 11 : i64} {
  func.func @_sst_kernel(%arg0: i32, %arg1: memref<1x8x32xf32, #tpu.memory_space<vmem>>, %arg2: memref<4x8xf32, #tpu.memory_space<vmem>>, %arg3: memref<1x8x48xf32, #tpu.memory_space<vmem>>, %arg4: memref<4x8xf32, #tpu.memory_space<vmem>>, %arg5: memref<16x32xf32, #tpu.memory_space<vmem>>, %arg6: memref<1x32xf32, #tpu.memory_space<vmem>>, %arg7: memref<1x32xf32, #tpu.memory_space<vmem>>, %arg8: memref<32x32xf32, #tpu.memory_space<vmem>>, %arg9: memref<1x32xf32, #tpu.memory_space<vmem>>, %arg10: memref<1x32xf32, #tpu.memory_space<vmem>>, %arg11: memref<1x32xf32, #tpu.memory_space<vmem>>, %arg12: memref<32x32xf32, #tpu.memory_space<vmem>>, %arg13: memref<1x32xf32, #tpu.memory_space<vmem>>, %arg14: memref<1x48xf32, #tpu.memory_space<vmem>>, %arg15: memref<1x48xf32, #tpu.memory_space<vmem>>, %arg16: memref<48x32xf32, #tpu.memory_space<vmem>>, %arg17: memref<1x32xf32, #tpu.memory_space<vmem>>, %arg18: memref<1x32xf32, #tpu.memory_space<vmem>>, %arg19: memref<1x32xf32, #tpu.memory_space<vmem>>, %arg20: memref<32x32xf32, #tpu.memory_space<vmem>>, %arg21: memref<1x32xf32, #tpu.memory_space<vmem>>, %arg22: memref<1x1xf32, #tpu.memory_space<vmem>>, %arg23: memref<4x4xf32, #tpu.memory_space<vmem>>, %arg24: memref<1x1xf32, #tpu.memory_space<vmem>>, %arg25: memref<4x16xf32, #tpu.memory_space<vmem>>, %arg26: memref<4x16xf32, #tpu.memory_space<vmem>>) attributes {dimension_semantics = [#tpu.dimension_semantics<arbitrary>], iteration_bounds = array<i64: 4>, scalar_prefetch = 0 : i64, scratch_operands = 2 : i64, tpu.core_type = #tpu.core_type<tc>, window_params = [{transform_indices = @transform_0, window_bounds = array<i64: 1, 8, 32>}, {pipeline_mode = #tpu.pipeline_mode<synchronous>, transform_indices = @transform_1, window_bounds = array<i64: 4, 8>}, {transform_indices = @transform_2, window_bounds = array<i64: 1, 8, 48>}, {pipeline_mode = #tpu.pipeline_mode<synchronous>, transform_indices = @transform_3, window_bounds = array<i64: 4, 8>}, {pipeline_mode = #tpu.pipeline_mode<synchronous>, transform_indices = @transform_4, window_bounds = array<i64: 16, 32>}, {pipeline_mode = #tpu.pipeline_mode<synchronous>, transform_indices = @transform_5, window_bounds = array<i64: 1, 32>}, {pipeline_mode = #tpu.pipeline_mode<synchronous>, transform_indices = @transform_6, window_bounds = array<i64: 1, 32>}, {pipeline_mode = #tpu.pipeline_mode<synchronous>, transform_indices = @transform_7, window_bounds = array<i64: 32, 32>}, {pipeline_mode = #tpu.pipeline_mode<synchronous>, transform_indices = @transform_8, window_bounds = array<i64: 1, 32>}, {pipeline_mode = #tpu.pipeline_mode<synchronous>, transform_indices = @transform_9, window_bounds = array<i64: 1, 32>}, {pipeline_mode = #tpu.pipeline_mode<synchronous>, transform_indices = @transform_10, window_bounds = array<i64: 1, 32>}, {pipeline_mode = #tpu.pipeline_mode<synchronous>, transform_indices = @transform_11, window_bounds = array<i64: 32, 32>}, {pipeline_mode = #tpu.pipeline_mode<synchronous>, transform_indices = @transform_12, window_bounds = array<i64: 1, 32>}, {pipeline_mode = #tpu.pipeline_mode<synchronous>, transform_indices = @transform_13, window_bounds = array<i64: 1, 48>}, {pipeline_mode = #tpu.pipeline_mode<synchronous>, transform_indices = @transform_14, window_bounds = array<i64: 1, 48>}, {pipeline_mode = #tpu.pipeline_mode<synchronous>, transform_indices = @transform_15, window_bounds = array<i64: 48, 32>}, {pipeline_mode = #tpu.pipeline_mode<synchronous>, transform_indices = @transform_16, window_bounds = array<i64: 1, 32>}, {pipeline_mode = #tpu.pipeline_mode<synchronous>, transform_indices = @transform_17, window_bounds = array<i64: 1, 32>}, {pipeline_mode = #tpu.pipeline_mode<synchronous>, transform_indices = @transform_18, window_bounds = array<i64: 1, 32>}, {pipeline_mode = #tpu.pipeline_mode<synchronous>, transform_indices = @transform_19, window_bounds = array<i64: 32, 32>}, {pipeline_mode = #tpu.pipeline_mode<synchronous>, transform_indices = @transform_20, window_bounds = array<i64: 1, 32>}, {pipeline_mode = #tpu.pipeline_mode<synchronous>, transform_indices = @transform_21, window_bounds = array<i64: 1, 1>}, {pipeline_mode = #tpu.pipeline_mode<synchronous>, transform_indices = @transform_22, window_bounds = array<i64: 4, 4>}, {pipeline_mode = #tpu.pipeline_mode<synchronous>, transform_indices = @transform_23, window_bounds = array<i64: 1, 1>}]} {
    %c0 = arith.constant 0 : index
    %c0_0 = arith.constant 0 : index
    %0 = vector.load %arg5[%c0, %c0_0] : memref<16x32xf32, #tpu.memory_space<vmem>>, vector<16x32xf32>
    %c0_1 = arith.constant 0 : index
    %c0_2 = arith.constant 0 : index
    %c0_3 = arith.constant 0 : index
    %1 = vector.load %arg1[%c0_1, %c0_2, %c0_3] : memref<1x8x32xf32, #tpu.memory_space<vmem>>, vector<1x8x32xf32>
    %2 = vector.shape_cast %1 : vector<1x8x32xf32> to vector<8x32xf32>
    %3 = arith.index_cast %arg0 : i32 to index
    %c0_4 = arith.constant 0 : index
    %4 = vector.load %arg2[%3, %c0_4] : memref<4x8xf32, #tpu.memory_space<vmem>>, vector<1x8xf32>
    %c0_5 = arith.constant 0 : index
    %c0_6 = arith.constant 0 : index
    %5 = vector.load %arg6[%c0_5, %c0_6] : memref<1x32xf32, #tpu.memory_space<vmem>>, vector<1x32xf32>
    %c0_7 = arith.constant 0 : index
    %c0_8 = arith.constant 0 : index
    %6 = vector.load %arg7[%c0_7, %c0_8] : memref<1x32xf32, #tpu.memory_space<vmem>>, vector<1x32xf32>
    %c0_9 = arith.constant 0 : index
    %c0_10 = arith.constant 0 : index
    %7 = vector.load %arg8[%c0_9, %c0_10] : memref<32x32xf32, #tpu.memory_space<vmem>>, vector<32x32xf32>
    %c0_11 = arith.constant 0 : index
    %c0_12 = arith.constant 0 : index
    %8 = vector.load %arg9[%c0_11, %c0_12] : memref<1x32xf32, #tpu.memory_space<vmem>>, vector<1x32xf32>
    %c0_13 = arith.constant 0 : index
    %c0_14 = arith.constant 0 : index
    %9 = vector.load %arg10[%c0_13, %c0_14] : memref<1x32xf32, #tpu.memory_space<vmem>>, vector<1x32xf32>
    %c0_15 = arith.constant 0 : index
    %c0_16 = arith.constant 0 : index
    %10 = vector.load %arg11[%c0_15, %c0_16] : memref<1x32xf32, #tpu.memory_space<vmem>>, vector<1x32xf32>
    %c0_17 = arith.constant 0 : index
    %c0_18 = arith.constant 0 : index
    %11 = vector.load %arg12[%c0_17, %c0_18] : memref<32x32xf32, #tpu.memory_space<vmem>>, vector<32x32xf32>
    %c0_19 = arith.constant 0 : index
    %c0_20 = arith.constant 0 : index
    %12 = vector.load %arg13[%c0_19, %c0_20] : memref<1x32xf32, #tpu.memory_space<vmem>>, vector<1x32xf32>
    %cst = arith.constant dense<0.000000e+00> : vector<8xf32>
    %13 = vector.multi_reduction <add>, %2, %cst [1] : vector<8x32xf32> to vector<8xf32>
    %14 = vector.shape_cast %13 : vector<8xf32> to vector<8x1xf32>
    %cst_21 = arith.constant 3.200000e+01 : f32
    %15 = vector.broadcast %cst_21 : f32 to vector<8x1xf32>
    %16 = arith.divf %14, %15 : vector<8x1xf32>
    %17 = vector.broadcast %16 : vector<8x1xf32> to vector<8x32xf32>
    %18 = arith.subf %2, %17 : vector<8x32xf32>
    %19 = arith.mulf %18, %18 : vector<8x32xf32>
    %cst_22 = arith.constant dense<0.000000e+00> : vector<8xf32>
    %20 = vector.multi_reduction <add>, %19, %cst_22 [1] : vector<8x32xf32> to vector<8xf32>
    %21 = vector.shape_cast %20 : vector<8xf32> to vector<8x1xf32>
    %cst_23 = arith.constant 3.200000e+01 : f32
    %22 = vector.broadcast %cst_23 : f32 to vector<8x1xf32>
    %23 = arith.divf %21, %22 : vector<8x1xf32>
    %24 = vector.broadcast %16 : vector<8x1xf32> to vector<8x32xf32>
    %25 = arith.subf %2, %24 : vector<8x32xf32>
    %cst_24 = arith.constant 9.99999974E-6 : f32
    %26 = vector.broadcast %cst_24 : f32 to vector<8x1xf32>
    %27 = arith.addf %23, %26 : vector<8x1xf32>
    %28 = math.rsqrt %27 : vector<8x1xf32>
    %29 = vector.broadcast %28 : vector<8x1xf32> to vector<8x32xf32>
    %30 = arith.mulf %25, %29 : vector<8x32xf32>
    %31 = vector.broadcast %5 : vector<1x32xf32> to vector<8x32xf32>
    %32 = arith.mulf %30, %31 : vector<8x32xf32>
    %33 = vector.broadcast %6 : vector<1x32xf32> to vector<8x32xf32>
    %34 = arith.addf %32, %33 : vector<8x32xf32>
    %cst_25 = arith.constant dense<0.000000e+00> : vector<8x32xf32>
    %35 = tpu.matmul %34, %7, %cst_25 {dimension_numbers = #tpu.dot_dimension_numbers<[1], [0], [0], [1], [0, 0, 1, 1], [], []>} : vector<8x32xf32>, vector<32x32xf32>, vector<8x32xf32> -> vector<8x32xf32>
    %36 = vector.broadcast %8 : vector<1x32xf32> to vector<8x32xf32>
    %37 = arith.addf %35, %36 : vector<8x32xf32>
    %cst_26 = arith.constant 5.000000e-01 : f32
    %38 = vector.broadcast %cst_26 : f32 to vector<8x32xf32>
    %39 = arith.mulf %38, %37 : vector<8x32xf32>
    %cst_27 = arith.constant 4.471500e-02 : f32
    %40 = vector.broadcast %cst_27 : f32 to vector<8x32xf32>
    %41 = arith.mulf %40, %37 : vector<8x32xf32>
    %42 = arith.mulf %41, %37 : vector<8x32xf32>
    %43 = arith.mulf %42, %37 : vector<8x32xf32>
    %44 = arith.addf %37, %43 : vector<8x32xf32>
    %cst_28 = arith.constant 0.797884583 : f32
    %45 = vector.broadcast %cst_28 : f32 to vector<8x32xf32>
    %46 = arith.mulf %45, %44 : vector<8x32xf32>
    %47 = math.tanh %46 : vector<8x32xf32>
    %cst_29 = arith.constant 1.000000e+00 : f32
    %48 = vector.broadcast %cst_29 : f32 to vector<8x32xf32>
    %49 = arith.addf %48, %47 : vector<8x32xf32>
    %50 = arith.mulf %39, %49 : vector<8x32xf32>
    %cst_30 = arith.constant dense<0.000000e+00> : vector<8xf32>
    %51 = vector.multi_reduction <add>, %50, %cst_30 [1] : vector<8x32xf32> to vector<8xf32>
    %52 = vector.shape_cast %51 : vector<8xf32> to vector<8x1xf32>
    %cst_31 = arith.constant 3.200000e+01 : f32
    %53 = vector.broadcast %cst_31 : f32 to vector<8x1xf32>
    %54 = arith.divf %52, %53 : vector<8x1xf32>
    %55 = vector.broadcast %54 : vector<8x1xf32> to vector<8x32xf32>
    %56 = arith.subf %50, %55 : vector<8x32xf32>
    %57 = arith.mulf %56, %56 : vector<8x32xf32>
    %cst_32 = arith.constant dense<0.000000e+00> : vector<8xf32>
    %58 = vector.multi_reduction <add>, %57, %cst_32 [1] : vector<8x32xf32> to vector<8xf32>
    %59 = vector.shape_cast %58 : vector<8xf32> to vector<8x1xf32>
    %cst_33 = arith.constant 3.200000e+01 : f32
    %60 = vector.broadcast %cst_33 : f32 to vector<8x1xf32>
    %61 = arith.divf %59, %60 : vector<8x1xf32>
    %62 = vector.broadcast %54 : vector<8x1xf32> to vector<8x32xf32>
    %63 = arith.subf %50, %62 : vector<8x32xf32>
    %cst_34 = arith.constant 9.99999974E-6 : f32
    %64 = vector.broadcast %cst_34 : f32 to vector<8x1xf32>
    %65 = arith.addf %61, %64 : vector<8x1xf32>
    %66 = math.rsqrt %65 : vector<8x1xf32>
    %67 = vector.broadcast %66 : vector<8x1xf32> to vector<8x32xf32>
    %68 = arith.mulf %63, %67 : vector<8x32xf32>
    %69 = vector.broadcast %9 : vector<1x32xf32> to vector<8x32xf32>
    %70 = arith.mulf %68, %69 : vector<8x32xf32>
    %71 = vector.broadcast %10 : vector<1x32xf32> to vector<8x32xf32>
    %72 = arith.addf %70, %71 : vector<8x32xf32>
    %cst_35 = arith.constant dense<0.000000e+00> : vector<8x32xf32>
    %73 = tpu.matmul %72, %11, %cst_35 {dimension_numbers = #tpu.dot_dimension_numbers<[1], [0], [0], [1], [0, 0, 1, 1], [], []>} : vector<8x32xf32>, vector<32x32xf32>, vector<8x32xf32> -> vector<8x32xf32>
    %74 = vector.broadcast %12 : vector<1x32xf32> to vector<8x32xf32>
    %75 = arith.addf %73, %74 : vector<8x32xf32>
    %cst_36 = arith.constant dense<0.000000e+00> : vector<8x16xf32>
    %76 = tpu.matmul %75, %0, %cst_36 {dimension_numbers = #tpu.dot_dimension_numbers<[1], [1], [0], [0], [0, 0, 1, 0], [], []>} : vector<8x32xf32>, vector<16x32xf32>, vector<8x16xf32> -> vector<8x16xf32>
    %cst_37 = arith.constant dense<0.000000e+00> : vector<1x16xf32>
    %77 = tpu.matmul %4, %76, %cst_37 {dimension_numbers = #tpu.dot_dimension_numbers<[1], [0], [0], [1], [0, 0, 1, 1], [], []>} : vector<1x8xf32>, vector<8x16xf32>, vector<1x16xf32> -> vector<1x16xf32>
    %c0_38 = arith.constant 0 : index
    %c0_39 = arith.constant 0 : index
    %c0_40 = arith.constant 0 : index
    %78 = vector.load %arg3[%c0_38, %c0_39, %c0_40] : memref<1x8x48xf32, #tpu.memory_space<vmem>>, vector<1x8x48xf32>
    %79 = vector.shape_cast %78 : vector<1x8x48xf32> to vector<8x48xf32>
    %80 = arith.index_cast %arg0 : i32 to index
    %c0_41 = arith.constant 0 : index
    %81 = vector.load %arg4[%80, %c0_41] : memref<4x8xf32, #tpu.memory_space<vmem>>, vector<1x8xf32>
    %c0_42 = arith.constant 0 : index
    %c0_43 = arith.constant 0 : index
    %82 = vector.load %arg14[%c0_42, %c0_43] : memref<1x48xf32, #tpu.memory_space<vmem>>, vector<1x48xf32>
    %c0_44 = arith.constant 0 : index
    %c0_45 = arith.constant 0 : index
    %83 = vector.load %arg15[%c0_44, %c0_45] : memref<1x48xf32, #tpu.memory_space<vmem>>, vector<1x48xf32>
    %c0_46 = arith.constant 0 : index
    %c0_47 = arith.constant 0 : index
    %84 = vector.load %arg16[%c0_46, %c0_47] : memref<48x32xf32, #tpu.memory_space<vmem>>, vector<48x32xf32>
    %c0_48 = arith.constant 0 : index
    %c0_49 = arith.constant 0 : index
    %85 = vector.load %arg17[%c0_48, %c0_49] : memref<1x32xf32, #tpu.memory_space<vmem>>, vector<1x32xf32>
    %c0_50 = arith.constant 0 : index
    %c0_51 = arith.constant 0 : index
    %86 = vector.load %arg18[%c0_50, %c0_51] : memref<1x32xf32, #tpu.memory_space<vmem>>, vector<1x32xf32>
    %c0_52 = arith.constant 0 : index
    %c0_53 = arith.constant 0 : index
    %87 = vector.load %arg19[%c0_52, %c0_53] : memref<1x32xf32, #tpu.memory_space<vmem>>, vector<1x32xf32>
    %c0_54 = arith.constant 0 : index
    %c0_55 = arith.constant 0 : index
    %88 = vector.load %arg20[%c0_54, %c0_55] : memref<32x32xf32, #tpu.memory_space<vmem>>, vector<32x32xf32>
    %c0_56 = arith.constant 0 : index
    %c0_57 = arith.constant 0 : index
    %89 = vector.load %arg21[%c0_56, %c0_57] : memref<1x32xf32, #tpu.memory_space<vmem>>, vector<1x32xf32>
    %cst_58 = arith.constant dense<0.000000e+00> : vector<8xf32>
    %90 = vector.multi_reduction <add>, %79, %cst_58 [1] : vector<8x48xf32> to vector<8xf32>
    %91 = vector.shape_cast %90 : vector<8xf32> to vector<8x1xf32>
    %cst_59 = arith.constant 4.800000e+01 : f32
    %92 = vector.broadcast %cst_59 : f32 to vector<8x1xf32>
    %93 = arith.divf %91, %92 : vector<8x1xf32>
    %94 = vector.broadcast %93 : vector<8x1xf32> to vector<8x48xf32>
    %95 = arith.subf %79, %94 : vector<8x48xf32>
    %96 = arith.mulf %95, %95 : vector<8x48xf32>
    %cst_60 = arith.constant dense<0.000000e+00> : vector<8xf32>
    %97 = vector.multi_reduction <add>, %96, %cst_60 [1] : vector<8x48xf32> to vector<8xf32>
    %98 = vector.shape_cast %97 : vector<8xf32> to vector<8x1xf32>
    %cst_61 = arith.constant 4.800000e+01 : f32
    %99 = vector.broadcast %cst_61 : f32 to vector<8x1xf32>
    %100 = arith.divf %98, %99 : vector<8x1xf32>
    %101 = vector.broadcast %93 : vector<8x1xf32> to vector<8x48xf32>
    %102 = arith.subf %79, %101 : vector<8x48xf32>
    %cst_62 = arith.constant 9.99999974E-6 : f32
    %103 = vector.broadcast %cst_62 : f32 to vector<8x1xf32>
    %104 = arith.addf %100, %103 : vector<8x1xf32>
    %105 = math.rsqrt %104 : vector<8x1xf32>
    %106 = vector.broadcast %105 : vector<8x1xf32> to vector<8x48xf32>
    %107 = arith.mulf %102, %106 : vector<8x48xf32>
    %108 = vector.broadcast %82 : vector<1x48xf32> to vector<8x48xf32>
    %109 = arith.mulf %107, %108 : vector<8x48xf32>
    %110 = vector.broadcast %83 : vector<1x48xf32> to vector<8x48xf32>
    %111 = arith.addf %109, %110 : vector<8x48xf32>
    %cst_63 = arith.constant dense<0.000000e+00> : vector<8x32xf32>
    %112 = tpu.matmul %111, %84, %cst_63 {dimension_numbers = #tpu.dot_dimension_numbers<[1], [0], [0], [1], [0, 0, 1, 1], [], []>} : vector<8x48xf32>, vector<48x32xf32>, vector<8x32xf32> -> vector<8x32xf32>
    %113 = vector.broadcast %85 : vector<1x32xf32> to vector<8x32xf32>
    %114 = arith.addf %112, %113 : vector<8x32xf32>
    %cst_64 = arith.constant 5.000000e-01 : f32
    %115 = vector.broadcast %cst_64 : f32 to vector<8x32xf32>
    %116 = arith.mulf %115, %114 : vector<8x32xf32>
    %cst_65 = arith.constant 4.471500e-02 : f32
    %117 = vector.broadcast %cst_65 : f32 to vector<8x32xf32>
    %118 = arith.mulf %117, %114 : vector<8x32xf32>
    %119 = arith.mulf %118, %114 : vector<8x32xf32>
    %120 = arith.mulf %119, %114 : vector<8x32xf32>
    %121 = arith.addf %114, %120 : vector<8x32xf32>
    %cst_66 = arith.constant 0.797884583 : f32
    %122 = vector.broadcast %cst_66 : f32 to vector<8x32xf32>
    %123 = arith.mulf %122, %121 : vector<8x32xf32>
    %124 = math.tanh %123 : vector<8x32xf32>
    %cst_67 = arith.constant 1.000000e+00 : f32
    %125 = vector.broadcast %cst_67 : f32 to vector<8x32xf32>
    %126 = arith.addf %125, %124 : vector<8x32xf32>
    %127 = arith.mulf %116, %126 : vector<8x32xf32>
    %cst_68 = arith.constant dense<0.000000e+00> : vector<8xf32>
    %128 = vector.multi_reduction <add>, %127, %cst_68 [1] : vector<8x32xf32> to vector<8xf32>
    %129 = vector.shape_cast %128 : vector<8xf32> to vector<8x1xf32>
    %cst_69 = arith.constant 3.200000e+01 : f32
    %130 = vector.broadcast %cst_69 : f32 to vector<8x1xf32>
    %131 = arith.divf %129, %130 : vector<8x1xf32>
    %132 = vector.broadcast %131 : vector<8x1xf32> to vector<8x32xf32>
    %133 = arith.subf %127, %132 : vector<8x32xf32>
    %134 = arith.mulf %133, %133 : vector<8x32xf32>
    %cst_70 = arith.constant dense<0.000000e+00> : vector<8xf32>
    %135 = vector.multi_reduction <add>, %134, %cst_70 [1] : vector<8x32xf32> to vector<8xf32>
    %136 = vector.shape_cast %135 : vector<8xf32> to vector<8x1xf32>
    %cst_71 = arith.constant 3.200000e+01 : f32
    %137 = vector.broadcast %cst_71 : f32 to vector<8x1xf32>
    %138 = arith.divf %136, %137 : vector<8x1xf32>
    %139 = vector.broadcast %131 : vector<8x1xf32> to vector<8x32xf32>
    %140 = arith.subf %127, %139 : vector<8x32xf32>
    %cst_72 = arith.constant 9.99999974E-6 : f32
    %141 = vector.broadcast %cst_72 : f32 to vector<8x1xf32>
    %142 = arith.addf %138, %141 : vector<8x1xf32>
    %143 = math.rsqrt %142 : vector<8x1xf32>
    %144 = vector.broadcast %143 : vector<8x1xf32> to vector<8x32xf32>
    %145 = arith.mulf %140, %144 : vector<8x32xf32>
    %146 = vector.broadcast %86 : vector<1x32xf32> to vector<8x32xf32>
    %147 = arith.mulf %145, %146 : vector<8x32xf32>
    %148 = vector.broadcast %87 : vector<1x32xf32> to vector<8x32xf32>
    %149 = arith.addf %147, %148 : vector<8x32xf32>
    %cst_73 = arith.constant dense<0.000000e+00> : vector<8x32xf32>
    %150 = tpu.matmul %149, %88, %cst_73 {dimension_numbers = #tpu.dot_dimension_numbers<[1], [0], [0], [1], [0, 0, 1, 1], [], []>} : vector<8x32xf32>, vector<32x32xf32>, vector<8x32xf32> -> vector<8x32xf32>
    %151 = vector.broadcast %89 : vector<1x32xf32> to vector<8x32xf32>
    %152 = arith.addf %150, %151 : vector<8x32xf32>
    %cst_74 = arith.constant dense<0.000000e+00> : vector<8x16xf32>
    %153 = tpu.matmul %152, %0, %cst_74 {dimension_numbers = #tpu.dot_dimension_numbers<[1], [1], [0], [0], [0, 0, 1, 0], [], []>} : vector<8x32xf32>, vector<16x32xf32>, vector<8x16xf32> -> vector<8x16xf32>
    %cst_75 = arith.constant dense<0.000000e+00> : vector<1x16xf32>
    %154 = tpu.matmul %81, %153, %cst_75 {dimension_numbers = #tpu.dot_dimension_numbers<[1], [0], [0], [1], [0, 0, 1, 1], [], []>} : vector<1x8xf32>, vector<8x16xf32>, vector<1x16xf32> -> vector<1x16xf32>
    %155 = arith.index_cast %arg0 : i32 to index
    %c0_76 = arith.constant 0 : index
    %156 = vector.load %arg25[%155, %c0_76] : memref<4x16xf32, #tpu.memory_space<vmem>>, vector<1x16xf32>
    tpu.vector_store %arg25[%155, %c0_76], %77 {strides = array<i32>} : memref<4x16xf32, #tpu.memory_space<vmem>>, vector<1x16xf32>,
    %157 = arith.index_cast %arg0 : i32 to index
    %c0_77 = arith.constant 0 : index
    %158 = vector.load %arg26[%157, %c0_77] : memref<4x16xf32, #tpu.memory_space<vmem>>, vector<1x16xf32>
    tpu.vector_store %arg26[%157, %c0_77], %154 {strides = array<i32>} : memref<4x16xf32, #tpu.memory_space<vmem>>, vector<1x16xf32>,
    %c3_i32 = arith.constant 3 : i32
    %159 = arith.cmpi eq, %arg0, %c3_i32 : i32
    %160 = arith.extui %159 : i1 to i32
    %c0_i32 = arith.constant 0 : i32
    %161 = arith.cmpi ne, %160, %c0_i32 : i32
    scf.if %161 {
      %c0_78 = arith.constant 0 : index
      %c0_79 = arith.constant 0 : index
      %162 = vector.load %arg25[%c0_78, %c0_79] : memref<4x16xf32, #tpu.memory_space<vmem>>, vector<4x16xf32>
      %cst_80 = arith.constant dense<0xFF800000> : vector<4xf32>
      %163 = vector.multi_reduction <maximumf>, %162, %cst_80 [1] : vector<4x16xf32> to vector<4xf32>
      %164 = vector.shape_cast %163 : vector<4xf32> to vector<4x1xf32>
      %165 = vector.broadcast %164 : vector<4x1xf32> to vector<4x16xf32>
      %166 = arith.subf %162, %165 : vector<4x16xf32>
      %167 = vector.shape_cast %166 : vector<4x16xf32> to vector<4x16x1xf32>
      %168 = vector.shape_cast %166 : vector<4x16xf32> to vector<4x1x16xf32>
      %169 = vector.broadcast %168 : vector<4x1x16xf32> to vector<4x16x16xf32>
      %170 = vector.broadcast %167 : vector<4x16x1xf32> to vector<4x16x16xf32>
      %171 = arith.cmpf oge, %169, %170 : vector<4x16x16xf32>
      %172 = arith.extui %171 : vector<4x16x16xi1> to vector<4x16x16xi32>
      %173 = arith.sitofp %172 : vector<4x16x16xi32> to vector<4x16x16xf32>
      %cst_81 = arith.constant dense<0.000000e+00> : vector<4x16xf32>
      %174 = vector.multi_reduction <add>, %173, %cst_81 [2] : vector<4x16x16xf32> to vector<4x16xf32>
      %175 = vector.broadcast %168 : vector<4x1x16xf32> to vector<4x16x16xf32>
      %176 = arith.mulf %173, %175 : vector<4x16x16xf32>
      %cst_82 = arith.constant dense<0.000000e+00> : vector<4x16xf32>
      %177 = vector.multi_reduction <add>, %176, %cst_82 [2] : vector<4x16x16xf32> to vector<4x16xf32>
      %178 = arith.mulf %174, %166 : vector<4x16xf32>
      %cst_83 = arith.constant 1.000000e+00 : f32
      %179 = vector.broadcast %cst_83 : f32 to vector<4x16xf32>
      %180 = arith.addf %179, %178 : vector<4x16xf32>
      %181 = arith.cmpf ogt, %180, %177 : vector<4x16xf32>
      %182 = arith.extui %181 : vector<4x16xi1> to vector<4x16xi32>
      %183 = arith.sitofp %182 : vector<4x16xi32> to vector<4x16xf32>
      %cst_84 = arith.constant dense<0.000000e+00> : vector<4xf32>
      %184 = vector.multi_reduction <add>, %183, %cst_84 [1] : vector<4x16xf32> to vector<4xf32>
      %185 = vector.shape_cast %184 : vector<4xf32> to vector<4x1xf32>
      %186 = arith.mulf %166, %183 : vector<4x16xf32>
      %cst_85 = arith.constant dense<0.000000e+00> : vector<4xf32>
      %187 = vector.multi_reduction <add>, %186, %cst_85 [1] : vector<4x16xf32> to vector<4xf32>
      %188 = vector.shape_cast %187 : vector<4xf32> to vector<4x1xf32>
      %cst_86 = arith.constant 1.000000e+00 : f32
      %189 = vector.broadcast %cst_86 : f32 to vector<4x1xf32>
      %190 = arith.subf %188, %189 : vector<4x1xf32>
      %191 = arith.divf %190, %185 : vector<4x1xf32>
      %192 = vector.broadcast %191 : vector<4x1xf32> to vector<4x16xf32>
      %193 = arith.subf %166, %192 : vector<4x16xf32>
      %cst_87 = arith.constant 0.000000e+00 : f32
      %194 = vector.broadcast %cst_87 : f32 to vector<4x16xf32>
      %195 = arith.maximumf %193, %194 : vector<4x16xf32>
      %cst_88 = arith.constant dense<0.000000e+00> : vector<4x32xf32>
      %196 = tpu.matmul %195, %0, %cst_88 {dimension_numbers = #tpu.dot_dimension_numbers<[1], [0], [0], [1], [0, 0, 1, 1], [], []>} : vector<4x16xf32>, vector<16x32xf32>, vector<4x32xf32> -> vector<4x32xf32>
      %197 = arith.mulf %196, %196 : vector<4x32xf32>
      %cst_89 = arith.constant dense<0.000000e+00> : vector<4xf32>
      %198 = vector.multi_reduction <add>, %197, %cst_89 [1] : vector<4x32xf32> to vector<4xf32>
      %199 = vector.shape_cast %198 : vector<4xf32> to vector<4x1xf32>
      %200 = math.sqrt %199 : vector<4x1xf32>
      %cst_90 = arith.constant 1.000000e-10 : f32
      %201 = vector.broadcast %cst_90 : f32 to vector<4x1xf32>
      %202 = arith.addf %200, %201 : vector<4x1xf32>
      %203 = vector.broadcast %202 : vector<4x1xf32> to vector<4x32xf32>
      %204 = arith.divf %196, %203 : vector<4x32xf32>
      %c0_91 = arith.constant 0 : index
      %c0_92 = arith.constant 0 : index
      %205 = vector.load %arg26[%c0_91, %c0_92] : memref<4x16xf32, #tpu.memory_space<vmem>>, vector<4x16xf32>
      %cst_93 = arith.constant dense<0xFF800000> : vector<4xf32>
      %206 = vector.multi_reduction <maximumf>, %205, %cst_93 [1] : vector<4x16xf32> to vector<4xf32>
      %207 = vector.shape_cast %206 : vector<4xf32> to vector<4x1xf32>
      %208 = vector.broadcast %207 : vector<4x1xf32> to vector<4x16xf32>
      %209 = arith.subf %205, %208 : vector<4x16xf32>
      %210 = vector.shape_cast %209 : vector<4x16xf32> to vector<4x16x1xf32>
      %211 = vector.shape_cast %209 : vector<4x16xf32> to vector<4x1x16xf32>
      %212 = vector.broadcast %211 : vector<4x1x16xf32> to vector<4x16x16xf32>
      %213 = vector.broadcast %210 : vector<4x16x1xf32> to vector<4x16x16xf32>
      %214 = arith.cmpf oge, %212, %213 : vector<4x16x16xf32>
      %215 = arith.extui %214 : vector<4x16x16xi1> to vector<4x16x16xi32>
      %216 = arith.sitofp %215 : vector<4x16x16xi32> to vector<4x16x16xf32>
      %cst_94 = arith.constant dense<0.000000e+00> : vector<4x16xf32>
      %217 = vector.multi_reduction <add>, %216, %cst_94 [2] : vector<4x16x16xf32> to vector<4x16xf32>
      %218 = vector.broadcast %211 : vector<4x1x16xf32> to vector<4x16x16xf32>
      %219 = arith.mulf %216, %218 : vector<4x16x16xf32>
      %cst_95 = arith.constant dense<0.000000e+00> : vector<4x16xf32>
      %220 = vector.multi_reduction <add>, %219, %cst_95 [2] : vector<4x16x16xf32> to vector<4x16xf32>
      %221 = arith.mulf %217, %209 : vector<4x16xf32>
      %cst_96 = arith.constant 1.000000e+00 : f32
      %222 = vector.broadcast %cst_96 : f32 to vector<4x16xf32>
      %223 = arith.addf %222, %221 : vector<4x16xf32>
      %224 = arith.cmpf ogt, %223, %220 : vector<4x16xf32>
      %225 = arith.extui %224 : vector<4x16xi1> to vector<4x16xi32>
      %226 = arith.sitofp %225 : vector<4x16xi32> to vector<4x16xf32>
      %cst_97 = arith.constant dense<0.000000e+00> : vector<4xf32>
      %227 = vector.multi_reduction <add>, %226, %cst_97 [1] : vector<4x16xf32> to vector<4xf32>
      %228 = vector.shape_cast %227 : vector<4xf32> to vector<4x1xf32>
      %229 = arith.mulf %209, %226 : vector<4x16xf32>
      %cst_98 = arith.constant dense<0.000000e+00> : vector<4xf32>
      %230 = vector.multi_reduction <add>, %229, %cst_98 [1] : vector<4x16xf32> to vector<4xf32>
      %231 = vector.shape_cast %230 : vector<4xf32> to vector<4x1xf32>
      %cst_99 = arith.constant 1.000000e+00 : f32
      %232 = vector.broadcast %cst_99 : f32 to vector<4x1xf32>
      %233 = arith.subf %231, %232 : vector<4x1xf32>
      %234 = arith.divf %233, %228 : vector<4x1xf32>
      %235 = vector.broadcast %234 : vector<4x1xf32> to vector<4x16xf32>
      %236 = arith.subf %209, %235 : vector<4x16xf32>
      %cst_100 = arith.constant 0.000000e+00 : f32
      %237 = vector.broadcast %cst_100 : f32 to vector<4x16xf32>
      %238 = arith.maximumf %236, %237 : vector<4x16xf32>
      %cst_101 = arith.constant dense<0.000000e+00> : vector<4x32xf32>
      %239 = tpu.matmul %238, %0, %cst_101 {dimension_numbers = #tpu.dot_dimension_numbers<[1], [0], [0], [1], [0, 0, 1, 1], [], []>} : vector<4x16xf32>, vector<16x32xf32>, vector<4x32xf32> -> vector<4x32xf32>
      %240 = arith.mulf %239, %239 : vector<4x32xf32>
      %cst_102 = arith.constant dense<0.000000e+00> : vector<4xf32>
      %241 = vector.multi_reduction <add>, %240, %cst_102 [1] : vector<4x32xf32> to vector<4xf32>
      %242 = vector.shape_cast %241 : vector<4xf32> to vector<4x1xf32>
      %243 = math.sqrt %242 : vector<4x1xf32>
      %cst_103 = arith.constant 1.000000e-10 : f32
      %244 = vector.broadcast %cst_103 : f32 to vector<4x1xf32>
      %245 = arith.addf %243, %244 : vector<4x1xf32>
      %246 = vector.broadcast %245 : vector<4x1xf32> to vector<4x32xf32>
      %247 = arith.divf %239, %246 : vector<4x32xf32>
      %c0_104 = arith.constant 0 : index
      %c0_105 = arith.constant 0 : index
      %248 = vector.load %arg22[%c0_104, %c0_105] : memref<1x1xf32, #tpu.memory_space<vmem>>, vector<1x1xf32>
      %cst_106 = arith.constant dense<0.000000e+00> : vector<4x4xf32>
      %249 = tpu.matmul %204, %247, %cst_106 {dimension_numbers = #tpu.dot_dimension_numbers<[1], [1], [0], [0], [0, 0, 1, 0], [], []>} : vector<4x32xf32>, vector<4x32xf32>, vector<4x4xf32> -> vector<4x4xf32>
      %250 = vector.broadcast %248 : vector<1x1xf32> to vector<4x4xf32>
      %251 = arith.mulf %249, %250 : vector<4x4xf32>
      %c0_107 = arith.constant 0 : index
      %c0_108 = arith.constant 0 : index
      %252 = vector.load %arg23[%c0_107, %c0_108] : memref<4x4xf32, #tpu.memory_space<vmem>>, vector<4x4xf32>
      tpu.vector_store %arg23[%c0_107, %c0_108], %251 {strides = array<i32>} : memref<4x4xf32, #tpu.memory_space<vmem>>, vector<4x4xf32>,
      %253 = tpu.iota {dimensions = array<i32: 0>} : vector<4x4xi32>
      %254 = tpu.iota {dimensions = array<i32: 1>} : vector<4x4xi32>
      %255 = arith.cmpi eq, %253, %254 : vector<4x4xi32>
      %256 = arith.extui %255 : vector<4x4xi1> to vector<4x4xi32>
      %257 = arith.sitofp %256 : vector<4x4xi32> to vector<4x4xf32>
      %258 = arith.mulf %251, %257 : vector<4x4xf32>
      %cst_109 = arith.constant dense<0.000000e+00> : vector<4xf32>
      %259 = vector.multi_reduction <add>, %258, %cst_109 [1] : vector<4x4xf32> to vector<4xf32>
      %260 = vector.shape_cast %259 : vector<4xf32> to vector<4x1xf32>
      %cst_110 = arith.constant dense<0xFF800000> : vector<4xf32>
      %261 = vector.multi_reduction <maximumf>, %251, %cst_110 [1] : vector<4x4xf32> to vector<4xf32>
      %262 = vector.shape_cast %261 : vector<4xf32> to vector<4x1xf32>
      %263 = vector.broadcast %262 : vector<4x1xf32> to vector<4x4xf32>
      %264 = arith.subf %251, %263 : vector<4x4xf32>
      %265 = math.exp %264 : vector<4x4xf32>
      %cst_111 = arith.constant dense<0.000000e+00> : vector<4xf32>
      %266 = vector.multi_reduction <add>, %265, %cst_111 [1] : vector<4x4xf32> to vector<4xf32>
      %267 = vector.shape_cast %266 : vector<4xf32> to vector<4x1xf32>
      %268 = math.log %267 : vector<4x1xf32>
      %269 = arith.addf %268, %262 : vector<4x1xf32>
      %270 = arith.mulf %251, %257 : vector<4x4xf32>
      %cst_112 = arith.constant dense<0.000000e+00> : vector<4xf32>
      %271 = vector.multi_reduction <add>, %270, %cst_112 [0] : vector<4x4xf32> to vector<4xf32>
      %272 = vector.shape_cast %271 : vector<4xf32> to vector<1x4xf32>
      %cst_113 = arith.constant dense<0xFF800000> : vector<4xf32>
      %273 = vector.multi_reduction <maximumf>, %251, %cst_113 [0] : vector<4x4xf32> to vector<4xf32>
      %274 = vector.shape_cast %273 : vector<4xf32> to vector<1x4xf32>
      %275 = vector.broadcast %274 : vector<1x4xf32> to vector<4x4xf32>
      %276 = arith.subf %251, %275 : vector<4x4xf32>
      %277 = math.exp %276 : vector<4x4xf32>
      %cst_114 = arith.constant dense<0.000000e+00> : vector<4xf32>
      %278 = vector.multi_reduction <add>, %277, %cst_114 [0] : vector<4x4xf32> to vector<4xf32>
      %279 = vector.shape_cast %278 : vector<4xf32> to vector<1x4xf32>
      %280 = math.log %279 : vector<1x4xf32>
      %281 = arith.addf %280, %274 : vector<1x4xf32>
      %282 = arith.subf %269, %260 : vector<4x1xf32>
      %cst_115 = arith.constant dense<0.000000e+00> : vector<1xf32>
      %283 = vector.multi_reduction <add>, %282, %cst_115 [0] : vector<4x1xf32> to vector<1xf32>
      %284 = vector.shape_cast %283 : vector<1xf32> to vector<1x1xf32>
      %285 = arith.subf %281, %272 : vector<1x4xf32>
      %cst_116 = arith.constant dense<0.000000e+00> : vector<1xf32>
      %286 = vector.multi_reduction <add>, %285, %cst_116 [1] : vector<1x4xf32> to vector<1xf32>
      %287 = vector.shape_cast %286 : vector<1xf32> to vector<1x1xf32>
      %288 = arith.addf %284, %287 : vector<1x1xf32>
      %cst_117 = arith.constant 5.000000e-01 : f32
      %289 = vector.broadcast %cst_117 : f32 to vector<1x1xf32>
      %290 = arith.mulf %289, %288 : vector<1x1xf32>
      %cst_118 = arith.constant 2.500000e-01 : f32
      %291 = vector.broadcast %cst_118 : f32 to vector<1x1xf32>
      %292 = arith.mulf %290, %291 : vector<1x1xf32>
      %c0_119 = arith.constant 0 : index
      %c0_120 = arith.constant 0 : index
      %293 = vector.load %arg24[%c0_119, %c0_120] : memref<1x1xf32, #tpu.memory_space<vmem>>, vector<1x1xf32>
      tpu.vector_store %arg24[%c0_119, %c0_120], %292 {strides = array<i32>} : memref<1x1xf32, #tpu.memory_space<vmem>>, vector<1x1xf32>,
    } else {
    }
    return
  }
  func.func @transform_0(%arg0: i32) -> (i32, i32, i32) {
    %c0_i32 = arith.constant 0 : i32
    %c0_i32_0 = arith.constant 0 : i32
    %c0_i32_1 = arith.constant 0 : i32
    return %arg0, %c0_i32, %c0_i32_0 : i32, i32, i32
  }
  func.func @transform_1(%arg0: i32) -> (i32, i32) {
    %c0_i32 = arith.constant 0 : i32
    %c0_i32_0 = arith.constant 0 : i32
    %c0_i32_1 = arith.constant 0 : i32
    return %c0_i32, %c0_i32_0 : i32, i32
  }
  func.func @transform_2(%arg0: i32) -> (i32, i32, i32) {
    %c0_i32 = arith.constant 0 : i32
    %c0_i32_0 = arith.constant 0 : i32
    %c0_i32_1 = arith.constant 0 : i32
    return %arg0, %c0_i32, %c0_i32_0 : i32, i32, i32
  }
  func.func @transform_3(%arg0: i32) -> (i32, i32) {
    %c0_i32 = arith.constant 0 : i32
    %c0_i32_0 = arith.constant 0 : i32
    %c0_i32_1 = arith.constant 0 : i32
    return %c0_i32, %c0_i32_0 : i32, i32
  }
  func.func @transform_4(%arg0: i32) -> (i32, i32) {
    %c0_i32 = arith.constant 0 : i32
    %c0_i32_0 = arith.constant 0 : i32
    %c0_i32_1 = arith.constant 0 : i32
    return %c0_i32, %c0_i32_0 : i32, i32
  }
  func.func @transform_5(%arg0: i32) -> (i32, i32) {
    %c0_i32 = arith.constant 0 : i32
    %c0_i32_0 = arith.constant 0 : i32
    %c0_i32_1 = arith.constant 0 : i32
    return %c0_i32, %c0_i32_0 : i32, i32
  }
  func.func @transform_6(%arg0: i32) -> (i32, i32) {
    %c0_i32 = arith.constant 0 : i32
    %c0_i32_0 = arith.constant 0 : i32
    %c0_i32_1 = arith.constant 0 : i32
    return %c0_i32, %c0_i32_0 : i32, i32
  }
  func.func @transform_7(%arg0: i32) -> (i32, i32) {
    %c0_i32 = arith.constant 0 : i32
    %c0_i32_0 = arith.constant 0 : i32
    %c0_i32_1 = arith.constant 0 : i32
    return %c0_i32, %c0_i32_0 : i32, i32
  }
  func.func @transform_8(%arg0: i32) -> (i32, i32) {
    %c0_i32 = arith.constant 0 : i32
    %c0_i32_0 = arith.constant 0 : i32
    %c0_i32_1 = arith.constant 0 : i32
    return %c0_i32, %c0_i32_0 : i32, i32
  }
  func.func @transform_9(%arg0: i32) -> (i32, i32) {
    %c0_i32 = arith.constant 0 : i32
    %c0_i32_0 = arith.constant 0 : i32
    %c0_i32_1 = arith.constant 0 : i32
    return %c0_i32, %c0_i32_0 : i32, i32
  }
  func.func @transform_10(%arg0: i32) -> (i32, i32) {
    %c0_i32 = arith.constant 0 : i32
    %c0_i32_0 = arith.constant 0 : i32
    %c0_i32_1 = arith.constant 0 : i32
    return %c0_i32, %c0_i32_0 : i32, i32
  }
  func.func @transform_11(%arg0: i32) -> (i32, i32) {
    %c0_i32 = arith.constant 0 : i32
    %c0_i32_0 = arith.constant 0 : i32
    %c0_i32_1 = arith.constant 0 : i32
    return %c0_i32, %c0_i32_0 : i32, i32
  }
  func.func @transform_12(%arg0: i32) -> (i32, i32) {
    %c0_i32 = arith.constant 0 : i32
    %c0_i32_0 = arith.constant 0 : i32
    %c0_i32_1 = arith.constant 0 : i32
    return %c0_i32, %c0_i32_0 : i32, i32
  }
  func.func @transform_13(%arg0: i32) -> (i32, i32) {
    %c0_i32 = arith.constant 0 : i32
    %c0_i32_0 = arith.constant 0 : i32
    %c0_i32_1 = arith.constant 0 : i32
    return %c0_i32, %c0_i32_0 : i32, i32
  }
  func.func @transform_14(%arg0: i32) -> (i32, i32) {
    %c0_i32 = arith.constant 0 : i32
    %c0_i32_0 = arith.constant 0 : i32
    %c0_i32_1 = arith.constant 0 : i32
    return %c0_i32, %c0_i32_0 : i32, i32
  }
  func.func @transform_15(%arg0: i32) -> (i32, i32) {
    %c0_i32 = arith.constant 0 : i32
    %c0_i32_0 = arith.constant 0 : i32
    %c0_i32_1 = arith.constant 0 : i32
    return %c0_i32, %c0_i32_0 : i32, i32
  }
  func.func @transform_16(%arg0: i32) -> (i32, i32) {
    %c0_i32 = arith.constant 0 : i32
    %c0_i32_0 = arith.constant 0 : i32
    %c0_i32_1 = arith.constant 0 : i32
    return %c0_i32, %c0_i32_0 : i32, i32
  }
  func.func @transform_17(%arg0: i32) -> (i32, i32) {
    %c0_i32 = arith.constant 0 : i32
    %c0_i32_0 = arith.constant 0 : i32
    %c0_i32_1 = arith.constant 0 : i32
    return %c0_i32, %c0_i32_0 : i32, i32
  }
  func.func @transform_18(%arg0: i32) -> (i32, i32) {
    %c0_i32 = arith.constant 0 : i32
    %c0_i32_0 = arith.constant 0 : i32
    %c0_i32_1 = arith.constant 0 : i32
    return %c0_i32, %c0_i32_0 : i32, i32
  }
  func.func @transform_19(%arg0: i32) -> (i32, i32) {
    %c0_i32 = arith.constant 0 : i32
    %c0_i32_0 = arith.constant 0 : i32
    %c0_i32_1 = arith.constant 0 : i32
    return %c0_i32, %c0_i32_0 : i32, i32
  }
  func.func @transform_20(%arg0: i32) -> (i32, i32) {
    %c0_i32 = arith.constant 0 : i32
    %c0_i32_0 = arith.constant 0 : i32
    %c0_i32_1 = arith.constant 0 : i32
    return %c0_i32, %c0_i32_0 : i32, i32
  }
  func.func @transform_21(%arg0: i32) -> (i32, i32) {
    %c0_i32 = arith.constant 0 : i32
    %c0_i32_0 = arith.constant 0 : i32
    %c0_i32_1 = arith.constant 0 : i32
    return %c0_i32, %c0_i32_0 : i32, i32
  }
  func.func @transform_22(%arg0: i32) -> (i32, i32) {
    %c0_i32 = arith.constant 0 : i32
    %c0_i32_0 = arith.constant 0 : i32
    %c0_i32_1 = arith.constant 0 : i32
    return %c0_i32, %c0_i32_0 : i32, i32
  }
  func.func @transform_23(%arg0: i32) -> (i32, i32) {
    %c0_i32 = arith.constant 0 : i32
    %c0_i32_0 = arith.constant 0 : i32
    %c0_i32_1 = arith.constant 0 : i32
    return %c0_i32, %c0_i32_0 : i32, i32
  }
}

</mosaic_0001>

<bundles_post_ra>
// kernel: tpu_custom_call.1
= control target key start
LH: loop header
LB: loop body
LE: loop exit
PB: predicated region body
PF: predicated region fallthrough
CT: control target
= control target key end

     0   :  { %s4231_s0 = inlined_call_operand.vmem [shape: f32[4,8,32], index: 0, kind: input, shape index: {}]   ;;  %s4232_s1 = inlined_call_operand.hbm [shape: f32[4,8], index: 1, kind: input, shape index: {}]   ;;  %s4233_s2 = inlined_call_operand.vmem [shape: f32[4,8,48], index: 2, kind: input, shape index: {}]   ;;  %s4234_s3 = inlined_call_operand.hbm [shape: f32[4,8], index: 3, kind: input, shape index: {}]   ;;  %s4235_s4 = inlined_call_operand.hbm [shape: f32[16,32], index: 4, kind: input, shape index: {}]   ;;  %s4236_s5 = inlined_call_operand.hbm [shape: f32[1,32], index: 5, kind: input, shape index: {}]   ;;  %s4237_s6 = inlined_call_operand.hbm [shape: f32[1,32], index: 6, kind: input, shape index: {}]   ;;  %s4238_s7 = inlined_call_operand.hbm [shape: f32[32,32], index: 7, kind: input, shape index: {}]   ;;  %s4239_s8 = inlined_call_operand.hbm [shape: f32[1,32], index: 8, kind: input, shape index: {}]   ;;  %s4240_s9 = inlined_call_operand.vmem [shape: f32[1,32], index: 9, kind: input, shape index: {}]   ;;  %s4241_s10 = inlined_call_operand.vmem [shape: f32[1,32], index: 10, kind: input, shape index: {}]   ;;  %s4242_s11 = inlined_call_operand.vmem [shape: f32[32,32], index: 11, kind: input, shape index: {}]   ;;  %s4243_s12 = inlined_call_operand.vmem [shape: f32[1,32], index: 12, kind: input, shape index: {}]   ;;  %s4244_s13 = inlined_call_operand.vmem [shape: f32[1,48], index: 13, kind: input, shape index: {}]   ;;  %s4245_s14 = inlined_call_operand.vmem [shape: f32[1,48], index: 14, kind: input, shape index: {}]   ;;  %s4246_s15 = inlined_call_operand.vmem [shape: f32[48,32], index: 15, kind: input, shape index: {}]   ;;  %s4247_s16 = inlined_call_operand.vmem [shape: f32[1,32], index: 16, kind: input, shape index: {}]   ;;  %s4248_s17 = inlined_call_operand.vmem [shape: f32[1,32], index: 17, kind: input, shape index: {}]   ;;  %s4249_s18 = inlined_call_operand.vmem [shape: f32[1,32], index: 18, kind: input, shape index: {}]   ;;  %s4250_s19 = inlined_call_operand.hbm [shape: f32[32,32], index: 19, kind: input, shape index: {}]   ;;  %s4251_s20 = inlined_call_operand.vmem [shape: f32[1,32], index: 20, kind: input, shape index: {}]   ;;  %s4252_s21 = inlined_call_operand.<no memory space> [shape: f32[1,1], index: 21, kind: input, shape index: {}]   ;;  %s4253_s22 = inlined_call_operand.hbm [shape: f32[4,4], index: 22, kind: output, shape index: {0}]   ;;  %s4254_s23 = inlined_call_operand.hbm [shape: f32[1,1], index: 23, kind: output, shape index: {1}]  }
   0x1   :  { %4258 = sst [smem:[#allocation29_spill]] %s4231_s0  ;;  %v29_v0 = vstv %s4252_s21 }
   0x2   :  { %4259 = sst [smem:[#allocation30_spill]] %s4232_s1  ;;  %30 = vst [vmem:[#allocation4] sm:$0x1] %v29_v0 }
   0x3   :  { %4260 = sst [smem:[#allocation31_spill]] %s4233_s2 }
   0x4   :  { %4261 = sst [smem:[#allocation32_spill]] %s4234_s3 }
   0x5   :  { %4262 = sst [smem:[#allocation33_spill]] %s4235_s4 }
   0x6   :  { %4263 = sst [smem:[#allocation34_spill]] %s4236_s5 }
   0x7   :  { %4264 = sst [smem:[#allocation35_spill]] %s4237_s6 }
   0x8   :  { %4265 = sst [smem:[#allocation36_spill]] %s4238_s7 }
   0x9   :  { %4266 = sst [smem:[#allocation37_spill]] %s4254_s23 }
   0xa   :  { %31 = vsyncpa [#allocation6], 0 }
   0xb   :  { %32 = vsyncpa [#allocation9], 0 }
   0xc   :  { %33 = vsyncpa [#allocation12], 0 }
   0xd   :  { %34 = vsyncpa [#allocation15], 0 }
   0xe   :  { %35 = vsyncpa [#allocation18], 0 }
   0xf   :  { %36 = vsyncpa [#allocation7], 0 }
  0x10   :  { %37 = vsyncpa [#allocation21], 0  ;;  %s3670_s24 = smov 0  }
  0x11 LB: > { %s3529_s25 = smov [#allocation8]   ;;  %s3676_s5 = sadd.s32 4294967295, %s3527_s24   ;;  %s3527_s24 = sphi %s3670_s24, %s43_s24  }
  0x12   : > { %s586_s21 = sshll.u32 %s3529_s25, 4  ;;  %p2813_p0 = scmp.ge.s32.totalorder %s3527_s24, 1  ;;  %s587_s21 = int_to_ptr.vmem [resolvable:$true] %s586_s21 }
  0x13   : > { %p562_p1 = scmp.lt.s32.totalorder %s3527_s24, 5  ;;  %p4255_p2 = scmp.eq.s32.totalorder %s3676_s5, 0 }
  0x14   : > { %s3530_s26 = smov [#allocation11]   ;;  %s3531_s27 = smov [#allocation14]  }
  0x15   : > { %p3681_p3 = pnand %p2813_p0, %p562_p1  ;;  %s610_s2 = sshll.u32 %s3530_s26, 4  ;;  %s611_s2 = int_to_ptr.vmem [resolvable:$true] %s610_s2 }
  0x16   : > { %s631_s7 = sshll.u32 %s3531_s27, 4  ;;  %s3532_s28 = smov [#allocation5]   ;;  %s3693_s7 = int_to_ptr.vmem [resolvable:$true] %s631_s7 }
  0x17   : > { %s4267_s1 = scalar_select %p3681_p3, 1, 0 }
  0x18   : > { %p3092_p4 = pneg %p3681_p3  ;;  %s3695_s29 = sshll.u32 %s3532_s28, 4  ;;  %s576_s29 = int_to_ptr.vmem [resolvable:$true] %s3695_s29 }
  0x19   : > { %s3248_s0 = scalar_lea.vmem %s587_s21, 64  ;;  %p3256_p10 = scmp.lt.s32.totalorder %s587_s21, %s587_s21 }
  0x1a   : > { %p3689_p5 = pnand %p4255_p2, %p3092_p4  ;;  %p3249_p7 = scmp.ne.s32.totalorder %s587_s21, %s3248_s0 }
  0x1b   : > { %p3257_p11 = scmp.lt.s32.totalorder %s3248_s0, %s3248_s0 }
  0x1c   : > { %p3699_p6 = pneg %p3689_p5 }
  0x1d   : > { %p3258_p12 = por %p3257_p11, %p3256_p10 }
  0x1e   : > { %p3251_p8 = pnand %p3249_p7, %p3699_p6 }
  0x20   : > { %p3252_p9 = pneg %p3251_p8 }
  0x22   : > { %p3259_p13 = pnand %p3258_p12, %p3252_p9 }
  0x24   : > { %3262 = shalt.err (!%p3259_p13)
}
  0x25   : > { %s4270_s25 = sld [smem:[#allocation32_spill]]  ;;  %s3274_s26 = scalar_lea.vmem %s611_s2, 16 }
  0x26   : > { %p3275_p0 = scmp.ne.s32.totalorder %s611_s2, %s3274_s26  ;;  %s3281_s27 = scalar_lea.vmem %s611_s2, 32 }
  0x27   : > { %p3282_p7 = scmp.lt.s32.totalorder %s611_s2, %s611_s2  ;;  %p3283_p8 = scmp.lt.s32.totalorder %s3281_s27, %s3274_s26 }
  0x28   : > { %p3277_p1 = pnand %p3275_p0, %p3699_p6 }
  0x29   : > { %p3284_p2 = por %p3283_p8, %p3282_p7 }
  0x2a   : > { %p3278_p4 = pneg %p3277_p1 }
  0x2b   : > { %3098 = dma.hbm_to_vmem [thread:$0]  (!%p3689_p5), %s4270_s25, 64, %s587_s21, [#allocation9]  }
  0x2c   : > { %p3285_p3 = pnand %p3284_p2, %p3278_p4 }
  0x2e   : > { %3288 = shalt.err (!%p3285_p3)
}
  0x2f   : > { %s4271_s23 = sld [smem:[#allocation34_spill]]  ;;  %s3300_s21 = scalar_lea.vmem %s3693_s7, 512 }
  0x30   : > { %p3301_p9 = scmp.ne.s32.totalorder %s3693_s7, %s3300_s21  ;;  %p3308_p12 = scmp.lt.s32.totalorder %s3693_s7, %s3693_s7 }
  0x31   : > { %p3309_p13 = scmp.lt.s32.totalorder %s3300_s21, %s3300_s21 }
  0x32   : > { %p3303_p10 = pnand %p3301_p9, %p3699_p6 }
  0x33   : > { %p3310_p2 = por %p3309_p13, %p3308_p12 }
  0x34   : > { %p3304_p11 = pneg %p3303_p10 }
  0x35   : > { %3104 = dma.hbm_to_vmem [thread:$0]  (!%p3689_p5), %s4271_s23, 16, %s611_s2, [#allocation12]  }
  0x36   : > { %p3311_p3 = pnand %p3310_p2, %p3304_p11 }
  0x38   : > { %3314 = shalt.err (!%p3311_p3)
}
  0x39   : > { %s4257_s4 = smov 128   ;;  %s3534_s30 = smov 8  }
  0x3a   : > { %s4272_s25 = sld [smem:[#allocation36_spill]]  ;;  %s3326_s26 = scalar_lea.vmem %s576_s29, 64 }
  0x3b   : > { %p3327_p0 = scmp.ne.s32.totalorder %s576_s29, %s3326_s26  ;;  %p3334_p7 = scmp.lt.s32.totalorder %s576_s29, %s576_s29 }
  0x3c   : > { %p3335_p8 = scmp.lt.s32.totalorder %s3326_s26, %s3326_s26 }
  0x3d   : > { %p3329_p1 = pnand %p3327_p0, %p3699_p6 }
  0x3e   : > { %p3336_p9 = por %p3335_p8, %p3334_p7 }
  0x3f   : > { %p3330_p4 = pneg %p3329_p1 }
  0x40   : > { %3110 = dma.hbm_to_vmem [thread:$0]  (!%p3689_p5), %s4272_s25, 512, %s3693_s7, [#allocation15], %s4257_s4, %s4257_s4, %s3534_s30  }
  0x41   : > { %p3337_p10 = pnand %p3336_p9, %p3330_p4 }
  0x43   : > { %3340 = shalt.err (!%p3337_p10)
}
  0x44   : > { %s4273_s0 = sld [smem:[#allocation30_spill]]  ;;  %s3535_s21 = smov [#allocation10]  }
  0x45   : > { %s596_s7 = sshll.u32 %s3535_s21, 4  ;;  %s3536_s23 = smov [#allocation13]   ;;  %s597_s7 = int_to_ptr.vmem [resolvable:$true] %s596_s7 }
  0x46   : > { %s621_s2 = sshll.u32 %s3536_s23, 4  ;;  %s3352_s25 = scalar_lea.vmem %s597_s7, 256  ;;  %s622_s2 = int_to_ptr.vmem [resolvable:$true] %s621_s2 }
  0x47   : > { %p3353_p11 = scmp.ne.s32.totalorder %s597_s7, %s3352_s25  ;;  %p3360_p2 = scmp.lt.s32.totalorder %s597_s7, %s597_s7 }
  0x48   : > { %p3361_p3 = scmp.lt.s32.totalorder %s3352_s25, %s3352_s25 }
  0x49   : > { %p3355_p12 = pnand %p3353_p11, %p3699_p6 }
  0x4a   : > { %3095 = dma.hbm_to_vmem [thread:$0]  (!%p3689_p5), %s4273_s0, 64, %s576_s29, [#allocation6]  }
  0x4b   : > { %p3356_p13 = pneg %p3355_p12  ;;  %p3362_p0 = por %p3361_p3, %p3360_p2 }
  0x4d   : > { %p3363_p1 = pnand %p3362_p0, %p3356_p13 }
  0x4f   : > { %3366 = shalt.err (!%p3363_p1)
}
  0x50   : > { %s4274_s27 = sld [smem:[#allocation33_spill]]  ;;  %s3378_s28 = scalar_lea.vmem %s622_s2, 16 }
  0x51   : > { %p3379_p4 = scmp.ne.s32.totalorder %s622_s2, %s3378_s28  ;;  %s3385_s0 = scalar_lea.vmem %s622_s2, 32 }
  0x52   : > { %p3386_p9 = scmp.lt.s32.totalorder %s622_s2, %s622_s2  ;;  %p3387_p10 = scmp.lt.s32.totalorder %s3385_s0, %s3378_s28 }
  0x53   : > { %p3381_p7 = pnand %p3379_p4, %p3699_p6 }
  0x54   : > { %p3388_p11 = por %p3387_p10, %p3386_p9 }
  0x55   : > { %p3382_p8 = pneg %p3381_p7 }
  0x56   : > { %3101 = dma.hbm_to_vmem [thread:$0]  (!%p3689_p5), %s4274_s27, 256, %s597_s7, [#allocation9], %s4257_s4, %s4257_s4, %s3534_s30  }
  0x57   : > { %p3389_p12 = pnand %p3388_p11, %p3382_p8 }
  0x59   : > { %3392 = shalt.err (!%p3389_p12)
}
  0x5a   : > { %s4275_s25 = sld [smem:[#allocation35_spill]]  ;;  %s3537_s7 = smov [#allocation16]  }
  0x5b   : > { %s645_s29 = sshll.u32 %s3537_s7, 4  ;;  %s3538_s26 = smov [#allocation17]   ;;  %s646_s29 = int_to_ptr.vmem [resolvable:$true] %s645_s29 }
  0x5c   : > { %s685_s27 = sshll.u32 %s3538_s26, 4  ;;  %s3404_s4 = scalar_lea.vmem %s646_s29, 16  ;;  %s686_s27 = int_to_ptr.vmem [resolvable:$true] %s685_s27 }
  0x5d   : > { %p3405_p13 = scmp.ne.s32.totalorder %s646_s29, %s3404_s4  ;;  %s3411_s28 = scalar_lea.vmem %s646_s29, 32 }
  0x5e   : > { %p3412_p0 = scmp.lt.s32.totalorder %s646_s29, %s646_s29  ;;  %p3413_p1 = scmp.lt.s32.totalorder %s3411_s28, %s3404_s4 }
  0x5f   : > { %p3407_p2 = pnand %p3405_p13, %p3699_p6 }
  0x60   : > { %3107 = dma.hbm_to_vmem [thread:$0]  (!%p3689_p5), %s4275_s25, 16, %s622_s2, [#allocation12]  }
  0x61   : > { %p3408_p3 = pneg %p3407_p2  ;;  %p3414_p4 = por %p3413_p1, %p3412_p0 }
  0x63   : > { %p3415_p7 = pnand %p3414_p4, %p3408_p3 }
  0x65   : > { %3418 = shalt.err (!%p3415_p7)
}
  0x66   : > { %3113 = dma.hbm_to_vmem [thread:$0]  (!%p3689_p5), %s4239_s8, 16, %s646_s29, [#allocation15]  }
  0x67   : > { %s3430_s21 = scalar_lea.vmem %s686_s27, 512  ;;  %p3438_p11 = scmp.lt.s32.totalorder %s686_s27, %s686_s27 }
  0x68   : > { %p3431_p8 = scmp.ne.s32.totalorder %s686_s27, %s3430_s21  ;;  %p3439_p12 = scmp.lt.s32.totalorder %s3430_s21, %s3430_s21 }
  0x6a   : > { %p3433_p9 = pnand %p3431_p8, %p3699_p6  ;;  %p3440_p13 = por %p3439_p12, %p3438_p11 }
  0x6c   : > { %p3434_p10 = pneg %p3433_p9 }
  0x6e   : > { %p3441_p2 = pnand %p3440_p13, %p3434_p10 }
  0x70   : > { %3444 = shalt.err (!%p3441_p2)
}
  0x71   : > { %s4276_s4 = smov 128   ;;  %p4277_p3 = scmp.ne.s32.totalorder %s4267_s1, 0 }
  0x72   : > { %3116 = dma.hbm_to_vmem [thread:$0]  (!%p3689_p5), %s4250_s19, 512, %s686_s27, [#allocation18], %s4276_s4, %s4276_s4, %s3534_s30  }
  0x73   : > { %721 = sbr.rel (%p4277_p3) target bundleno = 4210 (0x1072), region = 108  ;;  %p4278_p6 = scmp.eq.s32.totalorder (!%p4277_p3), %s3676_s5, 0 }
  0x78   : > { %3498 = dma.done.wait (%p4278_p6), [#allocation6], 64   ;;  %p4279_p0 = pmov %p4278_p6 }
  0x7a   : > { %3500 = vsyncadd (%p4279_p0), [#allocation6], 4294967232  ;;  %p4280_p1 = pmov %p4279_p0 }
  0x7b   : > { %p4281_p4 = pmov %p4279_p0 }
  0x7c   : > { %3502 = dma.done.wait (%p4280_p1), [#allocation9], 320  }
  0x7d   : > { %3504 = vsyncadd (%p4281_p4), [#allocation9], 4294966976  ;;  %p4282_p7 = pmov %p4279_p0 }
  0x7e   : > { %p4283_p5 = pmov %p4279_p0 }
  0x7f   : > { %3506 = dma.done.wait (%p4282_p7), [#allocation12], 32  }
  0x80   : > { %3508 = vsyncadd (%p4283_p5), [#allocation12], 4294967264  ;;  %p4284_p8 = pmov %p4279_p0 }
  0x81   : > { %p4285_p9 = pmov %p4279_p0 }
  0x82   : > { %3510 = dma.done.wait (%p4284_p8), [#allocation15], 528  }
  0x83   : > { %3512 = vsyncadd (%p4285_p9), [#allocation15], 4294966768  ;;  %p4286_p10 = pmov %p4279_p0 }
  0x84   : > { %p4287_p11 = pmov %p4279_p0 }
  0x85   : > { %3514 = dma.done.wait (%p4286_p10), [#allocation18], 512  }
  0x86   : > { %3516 = vsyncadd (%p4287_p11), [#allocation18], 4294966784  ;;  %p811_p12 = scmp.lt.s32.totalorder %s3676_s5, 3  ;;  %s4288_s7 = sld [smem:[#allocation29_spill]]  ;;  %vm838_vm0 = vcmask 261120   ;;  %v829_v8 = vld [vmem:[#allocation14 + $0x18] sm:$0xff] }
  0x87   : > { %v3539_v9 = vmov 0.0   ;;  %v828_v10 = vld [vmem:[#allocation14 + $0x10] sm:$0xff]  ;;  %vm3540_vm1 = vmmov 0   ;;  %v827_v11 = vld [vmem:[#allocation14 + $0x8] sm:$0xff]  ;;  %v826_v12 = vld [vmem:[#allocation14] sm:$0xff]  ;;  %s4289_s28 = sld [smem:[#allocation31_spill]] }
  0x88   : > { %s3798_s1 = scalar_select %p811_p12, %s3676_s5, 3  ;;  %2961 = vmatprep.subr.mxu0 %v3539_v9  ;;  %2969 = vmatprep.mubr.msk.f32.mxu0 %vm3540_vm1, %v3539_v9  ;;  %v2835_v17 = vld [vmem:[#allocation11] ss:$0 sm:$0xff]  ;;  %v2836_v19 = vld [vmem:[#allocation13] ss:$0 sm:$0xff]  ;;  %vm1233_vm2 = vcmask 392192  }
  0x89   : > { %2962 = vmatpush3.msra.mxu0 %v829_v8  ;;  %2972 = vmatprep.subr.mxu1 %v3539_v9  ;;  %v2837_v22 = vld [vmem:[#allocation16] ss:$0 sm:$0xff]  ;;  %v836_v43 = vld [vmem:[%s4242_s11 + $0x18] sm:$0xff]  ;;  %v835_v44 = vld [vmem:[%s4242_s11 + $0x10] sm:$0xff]  ;;  %vm1140_vm3 = vcmask 64512   ;;  %vm1603_vm4 = vcmask 122880  }
  0x8a   : > { %s2832_s6 = sshll.u32 %s3798_s1, 3  ;;  %2963 = vmatprep.subr.mxu0 %v3539_v9  ;;  %2980 = vmatprep.mubr.msk.f32.mxu1 %vm3540_vm1, %v3539_v9  ;;  %v834_v45 = vld [vmem:[%s4242_s11 + $0x8] sm:$0xff]  ;;  %v833_v46 = vld [vmem:[%s4242_s11] sm:$0xff]  ;;  %v3860_v62 = vld [vmem:[#allocation10] sm:$0xff]  ;;  %s2915_s21 = scalar_lea.vmem [#allocation2], %s3527_s24 }
  0x8b   : > { %2964 = vmatpush3.msra.mxu0 %v828_v10  ;;  %2973 = vmatpush3.msra.mxu1 %v836_v43  ;;  %v3845_v48 = vld [vmem:[#allocation10 + $0x8] sm:$0xff]  ;;  %v1224_v8 = vld [vmem:[%s4246_s15 + $0x28] sm:$0xff]  ;;  %s2918_s26 = scalar_lea.vmem [#allocation3], %s3527_s24  ;;  %p2862_p13 = scmp.ne.s32.totalorder %s3676_s5, 3 }
  0x8c   : > { %s814_s29 = scalar_lea.vmem %s4288_s7, %s2832_s6  ;;  %2965 = vmatprep.subr.mxu0 %v3539_v9  ;;  %2974 = vmatprep.subr.mxu1 %v3539_v9  ;;  %v2839_v57 = vld [vmem:[%s4240_s9] ss:$0 sm:$0xff] }
  0x8d   : > { %v821_v1 = vld [vmem:[%s814_s29] sm:$0xff]  ;;  %2966 = vmatpush3.msra.mxu0 %v827_v11  ;;  %s818_s0 = scalar_lea.vmem %s4289_s28, %s2832_s6  ;;  %2975 = vmatpush3.msra.mxu1 %v835_v44  ;;  %v1230_v44 = vld [vmem:[#allocation17 + $0x10] sm:$0xff]  ;;  %s2912_s29 = scalar_lea.vmem [#allocation8], %s3527_s24 }
  0x8e   : > { %v839_v2 = vsel %vm838_vm0, %v821_v1, 0.0  ;;  %2967 = vmatprep.subr.mxu0 %v3539_v9  ;;  %v1214_v36 = vld [vmem:[%s818_s0] sm:$0xff]  ;;  %2976 = vmatprep.subr.mxu1 %v3539_v9  ;;  %s2909_s0 = scalar_lea.vmem [#allocation5], %s3527_s24 }
  0x8f   : > { %840 = vadd.xlane.f32.xlu0 %v839_v2  ;;  %2968 = vmatpush3.msra.mxu0 %v826_v12  ;;  %v1234_v37 = vsel %vm1233_vm2, %v1214_v36, 0.0  ;;  %v2840_v59 = vld [vmem:[%s4241_s10] ss:$0 sm:$0xff] }
  0x90   : > { %2983 = vmatprep.subr.mxu0 %v3539_v9  ;;  %2977 = vmatpush3.msra.mxu1 %v834_v45  ;;  %v2841_v63 = vld [vmem:[%s4243_s12] ss:$0 sm:$0xff]  ;;  %v1229_v45 = vld [vmem:[#allocation17 + $0x8] sm:$0xff] }
  0x91   : > { %2978 = vmatprep.subr.mxu1 %v3539_v9  ;;  %v1223_v12 = vld [vmem:[%s4246_s15 + $0x20] sm:$0xff] }
  0x92   : > { %2979 = vmatpush3.msra.mxu1 %v833_v46  ;;  %v1231_v43 = vld [vmem:[#allocation17 + $0x18] sm:$0xff]  ;;  %v1228_v46 = vld [vmem:[#allocation17] sm:$0xff] }
  0x93   : > { %2990 = vmatprep.subr.mxu1 %v3539_v9 }
 0x118   : > { %v841_v3 = vpop.xlane.xlu0 %840 }
 0x119   : > { %v843_v4 = vmul.f32 0.03125, %v841_v3 }
 0x11b   : > { %v844_v5 = vsub.f32 %v821_v1, %v843_v4 }
 0x11d   : > { %v845_v6 = vmul.f32 %v844_v5, %v844_v5 }
 0x11f   : > { %v846_v7 = vsel %vm838_vm0, %v845_v6, 0.0  ;;  %v2911_v6 = vld [vmem:[%s2909_s0 - $0x1] sm:$0x1] }
 0x120   : > { %847 = vadd.xlane.f32.xlu0 %v846_v7 }
 0x124   : > { %1235 = vadd.xlane.f32.xlu0 %v1234_v37 }
 0x1a9   : > { %v848_v13 = vpop.xlane.xlu0 %847 }
 0x1aa   : > { %v849_v14 = vmul.f32 0.03125, %v848_v13 }
 0x1ac   : > { %v850_v15 = vadd.f32 1e-05, %v849_v14  ;;  %v1222_v14 = vld [vmem:[%s4246_s15 + $0x18] sm:$0xff] }
 0x1ad   : > { %v1236_v47 = vpop.xlane.xlu0 %1235 }
 0x1ae   : > { %3163 = vrsqrt.f32 %v850_v15  ;;  %v1238_v49 = vmul.f32 0.020833334, %v1236_v47  ;;  %v2848_v15 = vld [vmem:[%s4244_s13] ss:$0 sm:$0xff] }
 0x1b0   : > { %v1239_v50 = vsub.f32 %v1214_v36, %v1238_v49 }
 0x1b2   : > { %v1240_v51 = vmul.f32 %v1239_v50, %v1239_v50 }
 0x1b4   : > { %v1241_v52 = vsel %vm1233_vm2, %v1240_v51, 0.0 }
 0x1bb   : > { %v3164_v16 = vpop.eup %3163 }
 0x1bc   : > { %v852_v18 = vmul.f32 %v3164_v16, %v844_v5  ;;  %v1221_v16 = vld [vmem:[%s4246_s15 + $0x10] sm:$0xff] }
 0x1be   : > { %v859_v20 = vmul.f32 %v2835_v17, %v852_v18  ;;  %v1220_v17 = vld [vmem:[%s4246_s15 + $0x8] sm:$0xff] }
 0x1c0   : > { %v866_v21 = vadd.f32 %v2836_v19, %v859_v20  ;;  %v2849_v19 = vld [vmem:[%s4245_s14] ss:$0 sm:$0xff] }
 0x1c1   : > { %v1219_v20 = vld [vmem:[%s4246_s15] sm:$0xff] }
 0x1c2   : > { %2970 = vmatmul.mubr.msk.f32.vlgmr.msra.gmra.mxu0 %vm838_vm0, %v866_v21 }
 0x1c3   : > { %2987 = vmatprep.mubr.msk.f32.mxu0 %vm3540_vm1, %v3539_v9  ;;  %2984 = vmatpush3.xpose.msk.msra.mxu0 %vm838_vm0, %v3845_v48 }
 0x1c4   : > { %2985 = vmatprep.subr.mxu0 %v3539_v9 }
 0x1c7   : > { %2986 = vmatpush3.xpose.msk.msra.mxu0 %vm838_vm0, %v3860_v62 }
 0x1c8   : > { %3010 = vmatprep.subr.mxu0 %v3539_v9 }
 0x282   : > { %v942_v23 = vpop.f32.mrf.mxu0 }
 0x283   : > { %v943_v24 = vadd.f32 %v2837_v22, %v942_v23 }
 0x284   : > { %v2971_v25 = vpop.f32.mrf.mxu0 }
 0x285   : > { %v947_v26 = vmul.f32 0.044715, %v943_v24  ;;  %v946_v32 = vmul.f32 0.5, %v943_v24 }
 0x287   : > { %v948_v27 = vmul.f32 %v947_v26, %v943_v24 }
 0x289   : > { %v949_v28 = vmul.f32 %v948_v27, %v943_v24 }
 0x28b   : > { %v950_v29 = vadd.f32 %v949_v28, %v943_v24  ;;  %v2850_v24 = vld [vmem:[%s4247_s16] ss:$0 sm:$0xff] }
 0x28d   : > { %v951_v30 = vmul.f32 0.7978846, %v950_v29 }
 0x28f   : > { %3165 = vtanh.f32 %v951_v30 }
 0x29c   : > { %v3166_v31 = vpop.eup %3165 }
 0x29d   : > { %v953_v33 = vadd.f32 1.0, %v3166_v31 }
 0x29f   : > { %v954_v34 = vmul.f32 %v953_v33, %v946_v32 }
 0x2a1   : > { %v955_v35 = vsel %vm838_vm0, %v954_v34, 0.0 }
 0x2a2   : > { %956 = vadd.xlane.f32.xlu1 %v955_v35 }
 0x32b   : > { %v957_v38 = vpop.xlane.xlu1 %956 }
 0x32c   : > { %v958_v39 = vmul.f32 0.03125, %v957_v38 }
 0x32e   : > { %v959_v40 = vsub.f32 %v954_v34, %v958_v39 }
 0x330   : > { %v960_v41 = vmul.f32 %v959_v40, %v959_v40 }
 0x332   : > { %v961_v42 = vsel %vm838_vm0, %v960_v41, 0.0 }
 0x333   : > { %962 = vadd.xlane.f32.xlu1 %v961_v42 }
 0x337   : > { %1242 = vadd.xlane.f32.xlu1 %v1241_v52  ;;  %v2852_v52 = vld [vmem:[%s4248_s17] ss:$0 sm:$0xff] }
 0x3bc   : > { %v963_v53 = vpop.xlane.xlu1 %962 }
 0x3bd   : > { %v964_v54 = vmul.f32 0.03125, %v963_v53 }
 0x3bf   : > { %v965_v55 = vadd.f32 1e-05, %v964_v54  ;;  %v2853_v54 = vld [vmem:[%s4249_s18] ss:$0 sm:$0xff] }
 0x3c0   : > { %v1243_v3 = vpop.xlane.xlu1 %1242 }
 0x3c1   : > { %3167 = vrsqrt.f32 %v965_v55  ;;  %v1244_v4 = vmul.f32 0.020833334, %v1243_v3 }
 0x3c3   : > { %v1245_v5 = vadd.f32 1e-05, %v1244_v4 }
 0x3c5   : > { %3169 = vrsqrt.f32 %v1245_v5 }
 0x3ce   : > { %v3168_v56 = vpop.eup %3167 }
 0x3cf   : > { %v967_v58 = vmul.f32 %v3168_v56, %v959_v40 }
 0x3d1   : > { %v974_v60 = vmul.f32 %v2839_v57, %v967_v58  ;;  %v2854_v57 = vld [vmem:[%s4251_s20] ss:$0 sm:$0xff] }
 0x3d2   : > { %v3170_v10 = vpop.eup %3169 }
 0x3d3   : > { %v981_v61 = vadd.f32 %v2840_v59, %v974_v60  ;;  %v1247_v13 = vmul.f32 %v3170_v10, %v1239_v50 }
 0x3d5   : > { %2981 = vmatmul.mubr.msk.f32.vlgmr.msra.gmra.mxu1 %vm838_vm0, %v981_v61  ;;  %v1254_v18 = vmul.f32 %v2848_v15, %v1247_v13  ;;  %v2914_v61 = vld [vmem:[%s2912_s29 - $0x1] sm:$0x1] }
 0x3d6   : > { %2992 = vmatprep.mubr.msk.f32.mxu1 %vm3540_vm1, %v3539_v9 }
 0x3d7   : > { %v1261_v21 = vadd.f32 %v2849_v19, %v1254_v18 }
 0x495   : > { %v1057_v0 = vpop.f32.mrf.mxu1 }
 0x496   : > { %v1058_v1 = vadd.f32 %v2841_v63, %v1057_v0 }
 0x497   : > { %v2982_v2 = vpop.f32.mrf.mxu1 }
 0x498   : > { %2988 = vmatmul.mubr.msk.f32.vlgmr.msra.gmra.mxu0 %vm838_vm0, %v1058_v1 }
 0x499   : > { %3018 = vmatprep.mubr.msk.f32.mxu0 %vm3540_vm1, %v3539_v9  ;;  %3011 = vmatpush3.msra.mxu0 %v1231_v43 }
 0x49a   : > { %3012 = vmatprep.subr.mxu0 %v3539_v9 }
 0x49b   : > { %3013 = vmatpush3.msra.mxu0 %v1230_v44 }
 0x49c   : > { %3014 = vmatprep.subr.mxu0 %v3539_v9 }
 0x49d   : > { %3015 = vmatpush3.msra.mxu0 %v1229_v45 }
 0x49e   : > { %3016 = vmatprep.subr.mxu0 %v3539_v9 }
 0x49f   : > { %3017 = vmatpush3.msra.mxu0 %v1228_v46 }
 0x4a0   : > { %3021 = vmatprep.subr.mxu0 %v3539_v9 }
 0x558   : > { %v1136_v7 = vpop.f32.mrf.mxu0 }
 0x559   : > { %2991 = vmatpush3.msra.mxu1 %v1136_v7 }
 0x55a   : > { %v2989_v11 = vpop.f32.mrf.mxu0  ;;  %2993 = vmatmul.mubr.msk.f32.vlgmr.msra.gmra.mxu1 %vm1140_vm3, %v2911_v6  ;;  %2995 = vmatprep.subr.mxu1 %v3539_v9 }
 0x55b   : > { %2996 = vmatpush3.msra.mxu1 %v1224_v8  ;;  %3007 = vmatprep.mubr.msk.f32.mxu1 %vm3540_vm1, %v3539_v9 }
 0x55c   : > { %2997 = vmatprep.subr.mxu1 %v3539_v9 }
 0x55d   : > { %2998 = vmatpush3.msra.mxu1 %v1223_v12 }
 0x55e   : > { %2999 = vmatprep.subr.mxu1 %v3539_v9 }
 0x55f   : > { %3000 = vmatpush3.msra.mxu1 %v1222_v14 }
 0x560   : > { %3001 = vmatprep.subr.mxu1 %v3539_v9 }
 0x561   : > { %3002 = vmatpush3.msra.mxu1 %v1221_v16 }
 0x562   : > { %3003 = vmatprep.subr.mxu1 %v3539_v9 }
 0x563   : > { %3004 = vmatpush3.msra.mxu1 %v1220_v17 }
 0x564   : > { %3005 = vmatprep.subr.mxu1 %v3539_v9 }
 0x565   : > { %3006 = vmatpush3.msra.mxu1 %v1219_v20 }
 0x566   : > { %3008 = vmatmul.mubr.msk.f32.vlgmr.msra.gmra.mxu1 %vm1233_vm2, %v1261_v21  ;;  %3028 = vmatprep.subr.mxu1 %v3539_v9 }
 0x567   : > { %3030 = vmatprep.mubr.msk.f32.mxu1 %vm3540_vm1, %v3539_v9 }
 0x61a   : > { %v1210_v22 = vpop.f32.mrf.mxu1 }
 0x61b   : > { %2917 = vst.msk [vmem:[%s2915_s21 - $0x1] sm:$0x1] %vm1603_vm4, %v1210_v22 }
 0x61c   : > { %v2994_v23 = vpop.f32.mrf.mxu1 }
 0x626   : > { %v1337_v25 = vpop.f32.mrf.mxu1 }
 0x627   : > { %v1338_v26 = vadd.f32 %v2850_v24, %v1337_v25 }
 0x628   : > { %v3009_v27 = vpop.f32.mrf.mxu1 }
 0x629   : > { %v1342_v28 = vmul.f32 0.044715, %v1338_v26  ;;  %v1341_v34 = vmul.f32 0.5, %v1338_v26 }
 0x62b   : > { %v1343_v29 = vmul.f32 %v1342_v28, %v1338_v26 }
 0x62d   : > { %v1344_v30 = vmul.f32 %v1343_v29, %v1338_v26 }
 0x62f   : > { %v1345_v31 = vadd.f32 %v1344_v30, %v1338_v26 }
 0x631   : > { %v1346_v32 = vmul.f32 0.7978846, %v1345_v31 }
 0x633   : > { %3171 = vtanh.f32 %v1346_v32 }
 0x640   : > { %v3172_v33 = vpop.eup %3171 }
 0x641   : > { %v1348_v35 = vadd.f32 1.0, %v3172_v33 }
 0x643   : > { %v1349_v36 = vmul.f32 %v1348_v35, %v1341_v34 }
 0x645   : > { %v1350_v37 = vsel %vm838_vm0, %v1349_v36, 0.0 }
 0x646   : > { %1351 = vadd.xlane.f32.xlu0 %v1350_v37 }
 0x6cf   : > { %v1352_v38 = vpop.xlane.xlu0 %1351 }
 0x6d0   : > { %v1353_v39 = vmul.f32 0.03125, %v1352_v38 }
 0x6d2   : > { %v1354_v40 = vsub.f32 %v1349_v36, %v1353_v39 }
 0x6d4   : > { %v1355_v41 = vmul.f32 %v1354_v40, %v1354_v40 }
 0x6d6   : > { %v1356_v42 = vsel %vm838_vm0, %v1355_v41, 0.0 }
 0x6d7   : > { %1357 = vadd.xlane.f32.xlu1 %v1356_v42 }
 0x760   : > { %v1358_v47 = vpop.xlane.xlu1 %1357 }
 0x761   : > { %v1359_v49 = vmul.f32 0.03125, %v1358_v47 }
 0x763   : > { %v1360_v50 = vadd.f32 1e-05, %v1359_v49 }
 0x765   : > { %3173 = vrsqrt.f32 %v1360_v50 }
 0x772   : > { %v3174_v51 = vpop.eup %3173 }
 0x773   : > { %v1362_v53 = vmul.f32 %v3174_v51, %v1354_v40 }
 0x775   : > { %v1369_v55 = vmul.f32 %v2852_v52, %v1362_v53 }
 0x777   : > { %v1376_v56 = vadd.f32 %v2853_v54, %v1369_v55 }
 0x779   : > { %3019 = vmatmul.mubr.msk.f32.vlgmr.msra.gmra.mxu0 %vm838_vm0, %v1376_v56 }
 0x77a   : > { %3022 = vmatpush3.xpose.msk.msra.mxu0 %vm838_vm0, %v3845_v48  ;;  %3025 = vmatprep.mubr.msk.f32.mxu0 %vm3540_vm1, %v3539_v9 }
 0x77b   : > { %3023 = vmatprep.subr.mxu0 %v3539_v9 }
 0x77e   : > { %3024 = vmatpush3.xpose.msk.msra.mxu0 %vm838_vm0, %v3860_v62 }
 0x839   : > { %v1452_v58 = vpop.f32.mrf.mxu0 }
 0x83a   : > { %v1453_v59 = vadd.f32 %v2854_v57, %v1452_v58 }
 0x83b   : > { %v3020_v60 = vpop.f32.mrf.mxu0 }
 0x83c   : > { %3026 = vmatmul.mubr.msk.f32.vlgmr.msra.gmra.mxu0 %vm838_vm0, %v1453_v59 }
 0x8fc   : > { %v1525_v63 = vpop.f32.mrf.mxu0 }
 0x8fd   : > { %3029 = vmatpush3.msra.mxu1 %v1525_v63 }
 0x8fe   : > { %v3027_v0 = vpop.f32.mrf.mxu0  ;;  %3031 = vmatmul.mubr.msk.f32.vlgmr.msra.gmra.mxu1 %vm1140_vm3, %v2914_v61 }
 0x9bc   : > { %1610 = sbr.rel (%p2862_p13) target bundleno = 4176 (0x1050), region = 144 }
 0x9be   : > { %v1598_v9 = vpop.f32.mrf.mxu1 }
 0x9bf   : > { %2920 = vst.msk [vmem:[%s2918_s26 - $0x1] sm:$0x1] %vm1603_vm4, %v1598_v9 }
 0x9c0   : > { %v3032_v1 = vpop.f32.mrf.mxu1 }
 0x9c1   : > { %vm1612_vm5 = vcmask 125952   ;;  %v1611_v3 = vld [vmem:[#allocation2] sm:$0xf]  ;;  %v1617_v6 = vlaneseq  ;;  %v3541_v7 = vmov 0.0   ;;  %v3542_v24 = vmov 1966171168  }
 0x9c2   : > { %v1613_v5 = vsel %vm1612_vm5, %v1611_v3, -inf  ;;  %3040 = vmatprep.subr.mxu1 %v3541_v7  ;;  %3033 = vmatprep.subr.mxu0 %v3541_v7  ;;  %v1663_v25 = vunpack.c.l.s4 %v3542_v24  ;;  %vm1730_vm6 = vcmask 130048  }
 0x9c3   : > { %v3948_v8 = vshrl.u32 %v1617_v6, 7  ;;  %3041 = vmatpush3.msra.mxu1 %v3845_v48  ;;  %3034 = vmatpush3.msra.mxu0 %v3845_v48 }
 0x9c4   : > { %3042 = vmatprep.subr.mxu1 %v3541_v7  ;;  %3035 = vmatprep.subr.mxu0 %v3541_v7  ;;  %v1664_v26 = vunpack.c.0.s8 %v1663_v25 }
 0x9c5   : > { %3043 = vmatpush3.msra.mxu1 %v3860_v62  ;;  %3036 = vmatpush3.msra.mxu0 %v3860_v62  ;;  %v3958_v10 = vsub.s32 0, %v3948_v8  ;;  %v1630_v11 = vsub.s32 1, %v3948_v8  ;;  %v1641_v18 = vsub.s32 2, %v3948_v8  ;;  %v1652_v21 = vsub.s32 3, %v3948_v8 }
 0x9c6   : > { %v2058_v2 = vld [vmem:[#allocation3] sm:$0xf]  ;;  %3047 = vmatprep.subr.mxu0 %v3541_v7  ;;  %v1667_v27 = vsub.s32 %v1664_v26, %v3948_v8 }
 0x9c7   : > { %v2059_v4 = vsel %vm1612_vm5, %v2058_v2, -inf }
 0x9c8   : > { %2060 = vmax.xlane.f32.xlu0 %v2059_v4 }
 0x9cc   : > { %1614 = vmax.xlane.f32.xlu0 %v1613_v5 }
 0xa51   : > { %v2061_v12 = vpop.xlane.xlu0 %2060 }
 0xa52   : > { %v3961_v13 = vsub.f32 %v2058_v2, %v2061_v12 }
 0xa54   : > { %v2066_v48 = vrot.slane %v3961_v13, %v3958_v10  ;;  %v2077_v14 = vrot.slane %v3961_v13, %v1630_v11  ;;  %v2088_v20 = vrot.slane %v3961_v13, %v1641_v18  ;;  %v2099_v23 = vrot.slane %v3961_v13, %v1652_v21 }
 0xa55   : > { %v1615_v15 = vpop.xlane.xlu0 %1614  ;;  %v2114_v28 = vrot.slane %v3961_v13, %v1667_v27 }
 0xa56   : > { %v3966_v16 = vsub.f32 %v1611_v3, %v1615_v15  ;;  %2068 = vbcast.lane.b32.xlu1 %v2066_v48, 256  ;;  %2079 = vbcast.lane.b32.xlu0 %v2077_v14, 256 }
 0xa57   : > { %v2122_v29 = vrot.slane %v2114_v28, %v1667_v27  ;;  %v2115_v30 = vcombine.high %v2114_v28, %v2114_v28 }
 0xa58   : > { %v1620_v62 = vrot.slane %v3966_v16, %v3958_v10  ;;  %v1631_v17 = vrot.slane %v3966_v16, %v1630_v11  ;;  %v1642_v19 = vrot.slane %v3966_v16, %v1641_v18  ;;  %v3976_v22 = vrot.slane %v3966_v16, %v1652_v21 }
 0xa59   : > { %v3984_v31 = vrot.slane %v2122_v29, %v3958_v10  ;;  %v2129_v32 = vrot.slane %v2115_v30, %v1667_v27  ;;  %v2130_v41 = vcombine.high %v2122_v29, %v2122_v29  ;;  %v1668_v51 = vrot.slane %v3966_v16, %v1667_v27 }
 0xa5a   : > { %2072 = vbcast.lane.b32.xlu1 %v2066_v48, 264  ;;  %1626 = vbcast.lane.b32.xlu0 %v1620_v62, 264 }
 0xa5b   : > { %v3991_v36 = vrot.slane %v2129_v32, %v3958_v10  ;;  %v4010_v45 = vrot.slane %v2130_v41, %v3958_v10  ;;  %v2131_v53 = vcombine.high %v2129_v32, %v2129_v32  ;;  %v1676_v57 = vrot.slane %v1668_v51, %v1667_v27 }
 0xa5c   : > { %v1669_v58 = vcombine.high %v1668_v51, %v1668_v51 }
 0xa5d   : > { %v4028_v59 = vrot.slane %v2131_v53, %v3958_v10  ;;  %v4037_v9 = vrot.slane %v1676_v57, %v3958_v10  ;;  %v1684_v11 = vcombine.high %v1676_v57, %v1676_v57 }
 0xa5e   : > { %2083 = vbcast.lane.b32.xlu1 %v2077_v14, 264  ;;  %1637 = vbcast.lane.b32.xlu0 %v1631_v17, 264  ;;  %v1683_v1 = vrot.slane %v1669_v58, %v1667_v27 }
 0xa60   : > { %v4045_v5 = vrot.slane %v1683_v1, %v3958_v10  ;;  %v1685_v18 = vcombine.high %v1683_v1, %v1683_v1 }
 0xa62   : > { %2090 = vbcast.lane.b32.xlu1 %v2088_v20, 256  ;;  %1648 = vbcast.lane.b32.xlu0 %v1642_v19, 264  ;;  %v4062_v26 = vrot.slane %v1685_v18, %v3958_v10 }
 0xa66   : > { %2094 = vbcast.lane.b32.xlu1 %v2088_v20, 264  ;;  %1659 = vbcast.lane.b32.xlu0 %v3976_v22, 264 }
 0xa6a   : > { %2101 = vbcast.lane.b32.xlu1 %v2099_v23, 256  ;;  %2237 = vbcast.lane.b32.xlu0 %v2066_v48, 256 }
 0xa6e   : > { %2105 = vbcast.lane.b32.xlu1 %v2099_v23, 264  ;;  %2252 = vbcast.lane.b32.xlu0 %v2077_v14, 264 }
 0xa72   : > { %2263 = vbcast.lane.b32.xlu0 %v2088_v20, 264  ;;  %1622 = vbcast.lane.b32.xlu1 %v1620_v62, 256 }
 0xa76   : > { %2274 = vbcast.lane.b32.xlu0 %v2099_v23, 264  ;;  %1633 = vbcast.lane.b32.xlu1 %v1631_v17, 256 }
 0xa7a   : > { %1796 = vbcast.lane.b32.xlu0 %v1620_v62, 264  ;;  %1644 = vbcast.lane.b32.xlu1 %v1642_v19, 256 }
 0xa7e   : > { %1807 = vbcast.lane.b32.xlu0 %v1631_v17, 264  ;;  %1655 = vbcast.lane.b32.xlu1 %v3976_v22, 256 }
 0xa82   : > { %1818 = vbcast.lane.b32.xlu0 %v1642_v19, 264  ;;  %2241 = vbcast.lane.b32.xlu1 %v2066_v48, 264 }
 0xa86   : > { %2248 = vbcast.lane.b32.xlu1 %v2077_v14, 256 }
 0xa8a   : > { %2259 = vbcast.lane.b32.xlu1 %v2088_v20, 256 }
 0xa8e   : > { %2270 = vbcast.lane.b32.xlu1 %v2099_v23, 256 }
 0xa92   : > { %1792 = vbcast.lane.b32.xlu1 %v1620_v62, 256 }
 0xa96   : > { %1803 = vbcast.lane.b32.xlu1 %v1631_v17, 256  ;;  %v4053_v17 = vrot.slane %v1684_v11, %v3958_v10 }
 0xa9a   : > { %1814 = vbcast.lane.b32.xlu1 %v1642_v19, 256 }
 0xac8   : > { %v2069_v33 = vpop.permute.xlu1 %2068  ;;  %v2080_v34 = vpop.permute.xlu0 %2079 }
 0xac9   : > { %vm2152_vm7 = vcmp.ge.f32.partialorder %v3984_v31, %v2069_v33  ;;  %vm2154_vm8 = vcmp.ge.f32.partialorder %v3991_v36, %v2080_v34 }
 0xaca   : > { %v3988_v35 = vsel %vm2152_vm7, 1.0, %v3541_v7  ;;  %v4003_v43 = vsel %vm2154_vm8, 1.0, %v3541_v7 }
 0xacb   : > { %v2176_v37 = vsel %vm1730_vm6, %v3988_v35, 0.0  ;;  %v2182_v47 = vsel %vm1730_vm6, %v4003_v43, 0.0  ;;  %v2202_v51 = vmul.f32 %v4003_v43, %v3991_v36 }
 0xacc   : > { %v2073_v38 = vpop.permute.xlu1 %2072  ;;  %2177 = vadd.xlane.f32.xlu1 %v2176_v37  ;;  %v1627_v54 = vpop.permute.xlu0 %1626 }
 0xacd   : > { %vm2153_vm9 = vcmp.ge.f32.partialorder %v3984_v31, %v2073_v38  ;;  %vm1707_vm14 = vcmp.ge.f32.partialorder %v4037_v9, %v1627_v54  ;;  %v2214_v53 = vsel %vm1730_vm6, %v2202_v51, 0.0 }
 0xace   : > { %v3998_v39 = vsel %vm2153_vm9, 1.0, %v3541_v7  ;;  %v2864_v15 = vsel %vm1707_vm14, 1.0, %v3541_v7 }
 0xacf   : > { %v2179_v40 = vsel %vm1730_vm6, %v3998_v39, 0.0  ;;  %v1734_v20 = vsel %vm1730_vm6, %v2864_v15, 0.0 }
 0xad0   : > { %v2084_v42 = vpop.permute.xlu1 %2083  ;;  %2180 = vadd.xlane.f32.xlu0 %v2179_v40  ;;  %v1638_v63 = vpop.permute.xlu0 %1637 }
 0xad1   : > { %vm2155_vm10 = vcmp.ge.f32.partialorder %v3991_v36, %v2084_v42  ;;  %vm1709_vm1 = vcmp.ge.f32.partialorder %v4045_v5, %v1638_v63  ;;  %v2200_v42 = vmul.f32 %v3988_v35, %v3984_v31 }
 0xad2   : > { %v4007_v44 = vsel %vm2155_vm10, 1.0, %v3541_v7  ;;  %v2866_v23 = vsel %vm1709_vm1, 1.0, %v3541_v7 }
 0xad3   : > { %v2185_v46 = vsel %vm1730_vm6, %v4007_v44, 0.0  ;;  %v1740_v28 = vsel %vm1730_vm6, %v2866_v23, 0.0 }
 0xad4   : > { %v2091_v49 = vpop.permute.xlu1 %2090  ;;  %2186 = vadd.xlane.f32.xlu1 %v2185_v46  ;;  %2183 = vadd.xlane.f32.xlu0 %v2182_v47  ;;  %v1649_v48 = vpop.permute.xlu0 %1648  ;;  %v2201_v46 = vmul.f32 %v3998_v39, %v3984_v31  ;;  %v2208_v47 = vsel %vm1730_vm6, %v2200_v42, 0.0 }
 0xad5   : > { %vm2156_vm11 = vcmp.ge.f32.partialorder %v4010_v45, %v2091_v49  ;;  %vm1711_vm3 = vcmp.ge.f32.partialorder %v4053_v17, %v1649_v48 }
 0xad6   : > { %v4018_v50 = vsel %vm2156_vm11, 1.0, %v3541_v7  ;;  %v2868_v30 = vsel %vm1711_vm3, 1.0, %v3541_v7  ;;  %v2211_v49 = vsel %vm1730_vm6, %v2201_v46, 0.0 }
 0xad7   : > { %v2188_v52 = vsel %vm1730_vm6, %v4018_v50, 0.0  ;;  %v1746_v10 = vsel %vm1730_vm6, %v2868_v30, 0.0  ;;  %v2204_v31 = vmul.f32 %v4018_v50, %v4010_v45  ;;  %v1760_v1 = vmul.f32 %v2868_v30, %v4053_v17 }
 0xad8   : > { %v2095_v55 = vpop.permute.xlu1 %2094  ;;  %2189 = vadd.xlane.f32.xlu0 %v2188_v52  ;;  %v1660_v24 = vpop.permute.xlu0 %1659  ;;  %v2203_v52 = vmul.f32 %v4007_v44, %v3991_v36 }
 0xad9   : > { %vm2157_vm12 = vcmp.ge.f32.partialorder %v4010_v45, %v2095_v55  ;;  %vm1713_vm7 = vcmp.ge.f32.partialorder %v4062_v26, %v1660_v24  ;;  %v2220_v54 = vsel %vm1730_vm6, %v2204_v31, 0.0 }
 0xada   : > { %v4025_v56 = vsel %vm2157_vm12, 1.0, %v3541_v7  ;;  %v2870_v37 = vsel %vm1713_vm7, 1.0, %v3541_v7  ;;  %v2217_v35 = vsel %vm1730_vm6, %v2203_v52, 0.0 }
 0xadb   : > { %v2191_v60 = vsel %vm1730_vm6, %v4025_v56, 0.0  ;;  %v1752_v41 = vsel %vm1730_vm6, %v2870_v37, 0.0  ;;  %v2205_v39 = vmul.f32 %v4025_v56, %v4010_v45  ;;  %v1756_v45 = vmul.f32 %v2864_v15, %v4037_v9 }
 0xadc   : > { %v2102_v61 = vpop.permute.xlu1 %2101  ;;  %2192 = vadd.xlane.f32.xlu1 %v2191_v60  ;;  %v3543_v56 = vmov 0   ;;  %v2238_v48 = vpop.permute.xlu0 %2237 }
 0xadd   : > { %vm2158_vm13 = vcmp.ge.f32.partialorder %v4028_v59, %v2102_v61  ;;  %v2223_v43 = vsel %vm1730_vm6, %v2205_v39, 0.0  ;;  %3175 = vset.pattern.permute.xlu1 %v3543_v56  ;;  %3181 = vset.pattern.permute.xlu0 %v3543_v56  ;;  %v1766_v60 = vsel %vm1730_vm6, %v1756_v45, 0.0  ;;  %v1758_v61 = vmul.f32 %v2866_v23, %v4045_v5 }
 0xade   : > { %v4034_v0 = vsel %vm2158_vm13, 1.0, %v3541_v7 }
 0xadf   : > { %v2194_v2 = vsel %vm1730_vm6, %v4034_v0, 0.0  ;;  %v2206_v36 = vmul.f32 %v4034_v0, %v4028_v59  ;;  %v1772_v0 = vsel %vm1730_vm6, %v1758_v61, 0.0 }
 0xae0   : > { %v2106_v3 = vpop.permute.xlu1 %2105  ;;  %2195 = vadd.xlane.f32.xlu0 %v2194_v2  ;;  %v2253_v15 = vpop.permute.xlu0 %2252 }
 0xae1   : > { %vm2159_vm15 = vcmp.ge.f32.partialorder %v4028_v59, %v2106_v3  ;;  %v2226_v55 = vsel %vm1730_vm6, %v2206_v36, 0.0  ;;  %v1778_v3 = vsel %vm1730_vm6, %v1760_v1, 0.0 }
 0xae2   : > { %v2888_v4 = vsel %vm2159_vm15, 1.0, %v3541_v7 }
 0xae3   : > { %v2197_v12 = vsel %vm1730_vm6, %v2888_v4, 0.0  ;;  %v2207_v44 = vmul.f32 %v2888_v4, %v4028_v59 }
 0xae4   : > { %2198 = vadd.xlane.f32.xlu1 %v2197_v12  ;;  %v1623_v14 = vpop.permute.xlu1 %1622 }
 0xae5   : > { %vm1706_vm2 = vcmp.ge.f32.partialorder %v4037_v9, %v1623_v14  ;;  %v2229_v50 = vsel %vm1730_vm6, %v2207_v44, 0.0 }
 0xae6   : > { %v2863_v62 = vsel %vm1706_vm2, 1.0, %v3541_v7 }
 0xae7   : > { %v1731_v19 = vsel %vm1730_vm6, %v2863_v62, 0.0  ;;  %v1755_v57 = vmul.f32 %v2863_v62, %v4037_v9 }
 0xae8   : > { %v1634_v21 = vpop.permute.xlu1 %1633  ;;  %1732 = vadd.xlane.f32.xlu0 %v1731_v19  ;;  %1735 = vadd.xlane.f32.xlu1 %v1734_v20 }
 0xae9   : > { %vm1708_vm4 = vcmp.ge.f32.partialorder %v4045_v5, %v1634_v21  ;;  %v1763_v58 = vsel %vm1730_vm6, %v1755_v57, 0.0 }
 0xaea   : > { %v2865_v25 = vsel %vm1708_vm4, 1.0, %v3541_v7 }
 0xaeb   : > { %v1737_v27 = vsel %vm1730_vm6, %v2865_v25, 0.0  ;;  %v1757_v59 = vmul.f32 %v2865_v25, %v4045_v5  ;;  %v1762_v5 = vmul.f32 %v2870_v37, %v4062_v26 }
 0xaec   : > { %v1645_v29 = vpop.permute.xlu1 %1644  ;;  %1738 = vadd.xlane.f32.xlu0 %v1737_v27  ;;  %1741 = vadd.xlane.f32.xlu1 %v1740_v28 }
 0xaed   : > { %vm1710_vm8 = vcmp.ge.f32.partialorder %v4053_v17, %v1645_v29  ;;  %v1769_v63 = vsel %vm1730_vm6, %v1757_v59, 0.0  ;;  %v1784_v12 = vsel %vm1730_vm6, %v1762_v5, 0.0 }
 0xaee   : > { %v2867_v32 = vsel %vm1710_vm8, 1.0, %v3541_v7 }
 0xaef   : > { %v1743_v33 = vsel %vm1730_vm6, %v2867_v32, 0.0  ;;  %v1759_v9 = vmul.f32 %v2867_v32, %v4053_v17  ;;  %v2264_v17 = vpop.permute.xlu0 %2263 }
 0xaf0   : > { %v1656_v34 = vpop.permute.xlu1 %1655  ;;  %1744 = vadd.xlane.f32.xlu0 %v1743_v33  ;;  %1747 = vadd.xlane.f32.xlu1 %v1746_v10 }
 0xaf1   : > { %vm1712_vm9 = vcmp.ge.f32.partialorder %v4062_v26, %v1656_v34  ;;  %v1775_v2 = vsel %vm1730_vm6, %v1759_v9, 0.0 }
 0xaf2   : > { %v2869_v38 = vsel %vm1712_vm9, 1.0, %v3541_v7 }
 0xaf3   : > { %v1749_v40 = vsel %vm1730_vm6, %v2869_v38, 0.0  ;;  %v1761_v4 = vmul.f32 %v2869_v38, %v4062_v26  ;;  %v2275_v19 = vpop.permute.xlu0 %2274 }
 0xaf4   : > { %1750 = vadd.xlane.f32.xlu0 %v1749_v40  ;;  %1753 = vadd.xlane.f32.xlu1 %v1752_v41  ;;  %v2242_v14 = vpop.permute.xlu1 %2241 }
 0xaf5   : > { %v1781_v11 = vsel %vm1730_vm6, %v1761_v4, 0.0 }
 0xaf7   : > { %v1797_v21 = vpop.permute.xlu0 %1796 }
 0xaf8   : > { %2209 = vadd.xlane.f32.xlu0 %v2208_v47  ;;  %2212 = vadd.xlane.f32.xlu1 %v2211_v49  ;;  %v2249_v62 = vpop.permute.xlu1 %2248 }
 0xafb   : > { %v4118_v24 = vpop.permute.xlu0 %1807 }
 0xafc   : > { %2215 = vadd.xlane.f32.xlu0 %v2214_v53  ;;  %2218 = vadd.xlane.f32.xlu1 %v2217_v35  ;;  %v2260_v18 = vpop.permute.xlu1 %2259 }
 0xaff   : > { %v4122_v26 = vpop.permute.xlu0 %1818 }
 0xb00   : > { %2221 = vadd.xlane.f32.xlu0 %v2220_v54  ;;  %2224 = vadd.xlane.f32.xlu1 %v2223_v43  ;;  %v2271_v20 = vpop.permute.xlu1 %2270 }
 0xb04   : > { %2227 = vadd.xlane.f32.xlu0 %v2226_v55  ;;  %2230 = vadd.xlane.f32.xlu1 %v2229_v50  ;;  %v1793_v23 = vpop.permute.xlu1 %1792 }
 0xb08   : > { %1764 = vadd.xlane.f32.xlu0 %v1763_v58  ;;  %1767 = vadd.xlane.f32.xlu1 %v1766_v60  ;;  %v4120_v25 = vpop.permute.xlu1 %1803 }
 0xb0c   : > { %1770 = vadd.xlane.f32.xlu0 %v1769_v63  ;;  %1773 = vadd.xlane.f32.xlu1 %v1772_v0  ;;  %v4124_v27 = vpop.permute.xlu1 %1814 }
 0xb10   : > { %1776 = vadd.xlane.f32.xlu0 %v1775_v2  ;;  %1779 = vadd.xlane.f32.xlu1 %v1778_v3 }
 0xb14   : > { %1782 = vadd.xlane.f32.xlu0 %v1781_v11  ;;  %1785 = vadd.xlane.f32.xlu1 %v1784_v12 }
 0xb25   : > { %1825 = vbcast.lane.b32.xlu1 %v3976_v22, 256 }
 0xb2a   : > { %1829 = vbcast.lane.b32.xlu0 %v3976_v22, 264 }
 0xb55   : > { %v2178_v22 = vpop.xlane.xlu1 %2177 }
 0xb56   : > { %v2284_v47 = vmul.f32 %v2238_v48, %v2178_v22 }
 0xb58   : > { %v2292_v35 = vadd.f32 1.0, %v2284_v47 }
 0xb59   : > { %v2181_v28 = vpop.xlane.xlu0 %2180 }
 0xb5a   : > { %v2285_v49 = vmul.f32 %v2242_v14, %v2181_v28 }
 0xb5c   : > { %v2293_v31 = vadd.f32 1.0, %v2285_v49 }
 0xb5d   : > { %v2184_v29 = vpop.xlane.xlu0 %2183  ;;  %v2187_v30 = vpop.xlane.xlu1 %2186 }
 0xb5e   : > { %v2287_v53 = vmul.f32 %v2253_v15, %v2187_v30  ;;  %v2286_v39 = vmul.f32 %v2249_v62, %v2184_v29 }
 0xb60   : > { %v2295_v36 = vadd.f32 1.0, %v2287_v53  ;;  %v2294_v50 = vadd.f32 1.0, %v2286_v39 }
 0xb61   : > { %v2190_v32 = vpop.xlane.xlu0 %2189 }
 0xb62   : > { %v2288_v57 = vmul.f32 %v2260_v18, %v2190_v32 }
 0xb64   : > { %v2296_v0 = vadd.f32 1.0, %v2288_v57 }
 0xb65   : > { %v2193_v33 = vpop.xlane.xlu1 %2192 }
 0xb66   : > { %v2289_v45 = vmul.f32 %v2264_v17, %v2193_v33 }
 0xb68   : > { %v2297_v9 = vadd.f32 1.0, %v2289_v45 }
 0xb69   : > { %v2196_v10 = vpop.xlane.xlu0 %2195 }
 0xb6a   : > { %v2290_v59 = vmul.f32 %v2271_v20, %v2196_v10 }
 0xb6c   : > { %v2298_v5 = vadd.f32 1.0, %v2290_v59  ;;  %v4159_v59 = vand.u32 127, %v1617_v6 }
 0xb6d   : > { %v2199_v34 = vpop.xlane.xlu1 %2198 }
 0xb6e   : > { %v2291_v1 = vmul.f32 %v2275_v19, %v2199_v34 }
 0xb70   : > { %v2299_v48 = vadd.f32 1.0, %v2291_v1 }
 0xb71   : > { %v1736_v37 = vpop.xlane.xlu1 %1735  ;;  %v1733_v38 = vpop.xlane.xlu0 %1732 }
 0xb72   : > { %v1840_v14 = vmul.f32 %v1797_v21, %v1736_v37  ;;  %v1839_v15 = vmul.f32 %v1793_v23, %v1733_v38 }
 0xb74   : > { %v1848_v22 = vadd.f32 1.0, %v1840_v14  ;;  %v1847_v29 = vadd.f32 1.0, %v1839_v15 }
 0xb75   : > { %v1742_v40 = vpop.xlane.xlu1 %1741  ;;  %v1739_v41 = vpop.xlane.xlu0 %1738 }
 0xb76   : > { %v1842_v19 = vmul.f32 %v4118_v24, %v1742_v40  ;;  %v1841_v30 = vmul.f32 %v4120_v25, %v1739_v41 }
 0xb78   : > { %v1850_v23 = vadd.f32 1.0, %v1842_v19  ;;  %v1849_v24 = vadd.f32 1.0, %v1841_v30 }
 0xb79   : > { %v4126_v42 = vpop.xlane.xlu1 %1747  ;;  %v4128_v46 = vpop.xlane.xlu0 %1744 }
 0xb7a   : > { %v1844_v37 = vmul.f32 %v4122_v26, %v4126_v42  ;;  %v1843_v38 = vmul.f32 %v4124_v27, %v4128_v46 }
 0xb7c   : > { %v1852_v53 = vadd.f32 1.0, %v1844_v37 }
 0xb7d   : > { %v4130_v51 = vpop.xlane.xlu1 %1753  ;;  %v4132_v52 = vpop.xlane.xlu0 %1750 }
 0xb81   : > { %v2213_v54 = vpop.xlane.xlu1 %2212  ;;  %v2210_v43 = vpop.xlane.xlu0 %2209 }
 0xb82   : > { %vm2301_vm10 = vcmp.gt.f32.partialorder %v2293_v31, %v2213_v54  ;;  %vm2300_vm11 = vcmp.gt.f32.partialorder %v2292_v35, %v2210_v43  ;;  %v1851_v35 = vadd.f32 1.0, %v1843_v38 }
 0xb83   : > { %v2890_v44 = vsel %vm2301_vm10, 1.0, %v3541_v7  ;;  %v2889_v55 = vsel %vm2300_vm11, 1.0, %v3541_v7 }
 0xb84   : > { %v3176_v56 = vpack.i.bf16 %v2890_v44, %v2889_v55 }
 0xb85   : > { %v2219_v58 = vpop.xlane.xlu1 %2218  ;;  %v2216_v60 = vpop.xlane.xlu0 %2215 }
 0xb86   : > { %vm2303_vm12 = vcmp.gt.f32.partialorder %v2295_v36, %v2219_v58  ;;  %vm2302_vm13 = vcmp.gt.f32.partialorder %v2294_v50, %v2216_v60  ;;  %3177 = vperm.xlu1 %3175, %v3176_v56  }
 0xb87   : > { %v2892_v61 = vsel %vm2303_vm12, 1.0, %v3541_v7  ;;  %v2891_v63 = vsel %vm2302_vm13, 1.0, %v3541_v7  ;;  %vm1922_vm13 = vcmask 130112  }
 0xb88   : > { %v3182_v2 = vpack.i.bf16 %v2892_v61, %v2891_v63  ;;  %v1917_v61 = vadd.s32 4294967288, %v4159_v59 }
 0xb89   : > { %v2225_v3 = vpop.xlane.xlu1 %2224  ;;  %v2222_v4 = vpop.xlane.xlu0 %2221 }
 0xb8a   : > { %vm2305_vm14 = vcmp.gt.f32.partialorder %v2297_v9, %v2225_v3  ;;  %vm2304_vm15 = vcmp.gt.f32.partialorder %v2296_v0, %v2222_v4  ;;  %3183 = vperm.xlu0 %3181, %v3182_v2   ;;  %v1920_v1 = vsub.s32 %v1917_v61, %v3948_v8 }
 0xb8b   : > { %v2894_v11 = vsel %vm2305_vm14, 1.0, %v3541_v7  ;;  %v2893_v12 = vsel %vm2304_vm15, 1.0, %v3541_v7  ;;  %vm1951_vm14 = vcmask 1041409   ;;  %vm1953_vm15 = vcmask 1042434  }
 0xb8c   : > { %v3187_v62 = vpack.i.bf16 %v2894_v11, %v2893_v12 }
 0xb8d   : > { %v2231_v17 = vpop.xlane.xlu1 %2230  ;;  %v2228_v18 = vpop.xlane.xlu0 %2227 }
 0xb8e   : > { %vm2307_vm1 = vcmp.gt.f32.partialorder %v2299_v48, %v2231_v17  ;;  %vm2306_vm2 = vcmp.gt.f32.partialorder %v2298_v5, %v2228_v18  ;;  %3188 = vperm.xlu1 %3175, %v3187_v62  }
 0xb8f   : > { %v2896_v20 = vsel %vm2307_vm1, 1.0, %v3541_v7  ;;  %v2895_v28 = vsel %vm2306_vm2, 1.0, %v3541_v7  ;;  %vm1955_vm1 = vcmask 1043459   ;;  %vm3544_vm2 = vmmov 0  }
 0xb90   : > { %v3192_v32 = vpack.i.bf16 %v2896_v20, %v2895_v28  ;;  %3044 = vmatprep.mubr.msk.f32.mxu1 %vm3544_vm2, %v3541_v7  ;;  %3037 = vmatprep.mubr.msk.f32.mxu0 %vm3544_vm2, %v3541_v7 }
 0xb91   : > { %v1768_v33 = vpop.xlane.xlu1 %1767  ;;  %v1765_v21 = vpop.xlane.xlu0 %1764 }
 0xb92   : > { %vm1856_vm3 = vcmp.gt.f32.partialorder %v1848_v22, %v1768_v33  ;;  %vm1855_vm4 = vcmp.gt.f32.partialorder %v1847_v29, %v1765_v21  ;;  %3193 = vperm.xlu1 %3175, %v3192_v32  }
 0xb93   : > { %v2872_v10 = vsel %vm1856_vm3, 1.0, %v3541_v7  ;;  %v2871_v34 = vsel %vm1855_vm4, 1.0, %v3541_v7 }
 0xb94   : > { %v3197_v40 = vpack.i.bf16 %v2872_v10, %v2871_v34 }
 0xb95   : > { %v1774_v25 = vpop.xlane.xlu1 %1773  ;;  %v1771_v41 = vpop.xlane.xlu0 %1770 }
 0xb96   : > { %vm1858_vm7 = vcmp.gt.f32.partialorder %v1850_v23, %v1774_v25  ;;  %vm1857_vm8 = vcmp.gt.f32.partialorder %v1849_v24, %v1771_v41  ;;  %3198 = vperm.xlu0 %3181, %v3197_v40  }
 0xb97   : > { %v2874_v47 = vsel %vm1858_vm7, 1.0, %v3541_v7  ;;  %v2873_v49 = vsel %vm1857_vm8, 1.0, %v3541_v7  ;;  %vm2582_vm8 = vcmask 27648  }
 0xb98   : > { %v3202_v31 = vpack.i.bf16 %v2874_v47, %v2873_v49 }
 0xb99   : > { %v1780_v39 = vpop.xlane.xlu1 %1779  ;;  %v1777_v54 = vpop.xlane.xlu0 %1776 }
 0xb9a   : > { %vm1860_vm9 = vcmp.gt.f32.partialorder %v1852_v53, %v1780_v39  ;;  %vm1859_vm10 = vcmp.gt.f32.partialorder %v1851_v35, %v1777_v54  ;;  %3203 = vperm.xlu1 %3175, %v3202_v31  }
 0xb9b   : > { %v2876_v26 = vsel %vm1860_vm9, 1.0, %v3541_v7  ;;  %v2875_v27 = vsel %vm1859_vm10, 1.0, %v3541_v7  ;;  %vm2640_vm9 = vcmask 31744   ;;  %vm2631_vm10 = vcmask 1043456  }
 0xb9c   : > { %v3207_v42 = vpack.i.bf16 %v2876_v26, %v2875_v27 }
 0xb9d   : > { %v1786_v46 = vpop.xlane.xlu1 %1785  ;;  %v1783_v43 = vpop.xlane.xlu0 %1782 }
 0xb9e   : > { %3208 = vperm.xlu0 %3181, %v3207_v42  }
 0xba1   : > { %v1826_v36 = vpop.permute.xlu1 %1825  ;;  %v1830_v44 = vpop.permute.xlu0 %1829 }
 0xba2   : > { %v1845_v55 = vmul.f32 %v1826_v36, %v4132_v52  ;;  %v1846_v50 = vmul.f32 %v1830_v44, %v4130_v51  ;;  %v1915_v51 = vsub.s32 %v4159_v59, %v3948_v8 }
 0xba4   : > { %v1853_v57 = vadd.f32 1.0, %v1845_v55  ;;  %v1854_v45 = vadd.f32 1.0, %v1846_v50 }
 0xba6   : > { %vm1861_vm11 = vcmp.gt.f32.partialorder %v1853_v57, %v1783_v43  ;;  %vm1862_vm12 = vcmp.gt.f32.partialorder %v1854_v45, %v1786_v46 }
 0xba7   : > { %v2877_v56 = vsel %vm1861_vm11, 1.0, %v3541_v7  ;;  %v2878_v58 = vsel %vm1862_vm12, 1.0, %v3541_v7  ;;  %vm2647_vm11 = vcmask 0  }
 0xba8   : > { %v3212_v60 = vpack.i.bf16 %v2878_v58, %v2877_v56 }
 0xbaa   : > { %3213 = vperm.xlu1 %3175, %v3212_v60  }
 0xc01   : > { %v3178_v63 = vpop.permute.xlu1 %3177 }
 0xc02   : > { %v3180_v2 = vunpack.i.h.bf16 %v3178_v63  ;;  %v3179_v3 = vunpack.i.l.bf16 %v3178_v63 }
 0xc04   : > { %v2363_v6 = vrot.slane %v3180_v2, %v1920_v1  ;;  %v2359_v14 = vrot.slane %v3179_v3, %v1915_v51 }
 0xc05   : > { %v3184_v0 = vpop.permute.xlu0 %3183 }
 0xc06   : > { %v3186_v52 = vunpack.i.h.bf16 %v3184_v0  ;;  %v3185_v9 = vunpack.i.l.bf16 %v3184_v0  ;;  %v2364_v30 = vsel %vm1922_vm13, %v2363_v6, %v2359_v14 }
 0xc08   : > { %v2372_v5 = vrot.slane %v3186_v52, %v1920_v1  ;;  %v2368_v11 = vrot.slane %v3185_v9, %v1915_v51 }
 0xc09   : > { %v3189_v4 = vpop.permute.xlu1 %3188 }
 0xc0a   : > { %v3191_v12 = vunpack.i.h.bf16 %v3189_v4  ;;  %v3190_v48 = vunpack.i.l.bf16 %v3189_v4  ;;  %v2373_v20 = vsel %vm1922_vm13, %v2372_v5, %v2368_v11 }
 0xc0b   : > { %v2392_v32 = vsel %vm1951_vm14, %v2373_v20, %v2364_v30  ;;  %v2901_v20 = vld [vmem:[#allocation4] ss:$0 sm:$0xff] }
 0xc0c   : > { %v2381_v15 = vrot.slane %v3191_v12, %v1920_v1  ;;  %v2377_v62 = vrot.slane %v3190_v48, %v1915_v51 }
 0xc0d   : > { %v3194_v17 = vpop.permute.xlu1 %3193 }
 0xc0e   : > { %v3196_v18 = vunpack.i.h.bf16 %v3194_v17  ;;  %v3195_v19 = vunpack.i.l.bf16 %v3194_v17  ;;  %v2382_v28 = vsel %vm1922_vm13, %v2381_v15, %v2377_v62 }
 0xc0f   : > { %v2393_v21 = vsel %vm1953_vm15, %v2382_v28, %v2392_v32 }
 0xc10   : > { %v2390_v22 = vrot.slane %v3196_v18, %v1920_v1  ;;  %v2386_v29 = vrot.slane %v3195_v19, %v1915_v51 }
 0xc11   : > { %v3199_v24 = vpop.permute.xlu0 %3198 }
 0xc12   : > { %v2391_v33 = vsel %vm1922_vm13, %v2390_v22, %v2386_v29  ;;  %v3201_v53 = vunpack.i.h.bf16 %v3199_v24  ;;  %v3200_v35 = vunpack.i.l.bf16 %v3199_v24 }
 0xc13   : > { %v2394_v23 = vsel %vm1955_vm1, %v2391_v33, %v2393_v21 }
 0xc14   : > { %v2396_v10 = vsel %vm1612_vm5, %v2394_v23, 0.0  ;;  %v2399_v34 = vmul.f32 %v2394_v23, %v3961_v13  ;;  %v1921_v27 = vrot.slane %v3201_v53, %v1920_v1  ;;  %v1916_v42 = vrot.slane %v3200_v35, %v1915_v51 }
 0xc15   : > { %2397 = vadd.xlane.f32.xlu0 %v2396_v10  ;;  %v3204_v38 = vpop.permute.xlu1 %3203 }
 0xc16   : > { %v2400_v37 = vsel %vm1612_vm5, %v2399_v34, 0.0  ;;  %v3206_v25 = vunpack.i.h.bf16 %v3204_v38  ;;  %v3205_v41 = vunpack.i.l.bf16 %v3204_v38  ;;  %v1923_v45 = vsel %vm1922_vm13, %v1921_v27, %v1916_v42 }
 0xc18   : > { %v1931_v31 = vrot.slane %v3206_v25, %v1920_v1  ;;  %v1927_v39 = vrot.slane %v3205_v41, %v1915_v51 }
 0xc19   : > { %2401 = vadd.xlane.f32.xlu0 %v2400_v37  ;;  %v3209_v40 = vpop.permute.xlu0 %3208 }
 0xc1a   : > { %v3211_v47 = vunpack.i.h.bf16 %v3209_v40  ;;  %v3210_v49 = vunpack.i.l.bf16 %v3209_v40  ;;  %v1932_v44 = vsel %vm1922_vm13, %v1931_v31, %v1927_v39 }
 0xc1b   : > { %v1952_v56 = vsel %vm1951_vm14, %v1932_v44, %v1923_v45 }
 0xc1c   : > { %v1940_v54 = vrot.slane %v3211_v47, %v1920_v1  ;;  %v1936_v26 = vrot.slane %v3210_v49, %v1915_v51 }
 0xc1e   : > { %v1941_v55 = vsel %vm1922_vm13, %v1940_v54, %v1936_v26 }
 0xc1f   : > { %v1954_v60 = vsel %vm1953_vm15, %v1941_v55, %v1952_v56 }
 0xc25   : > { %v3214_v46 = vpop.permute.xlu1 %3213 }
 0xc26   : > { %v3216_v43 = vunpack.i.h.bf16 %v3214_v46  ;;  %v3215_v36 = vunpack.i.l.bf16 %v3214_v46 }
 0xc28   : > { %v1949_v50 = vrot.slane %v3216_v43, %v1920_v1  ;;  %v1945_v57 = vrot.slane %v3215_v36, %v1915_v51 }
 0xc2a   : > { %v1950_v58 = vsel %vm1922_vm13, %v1949_v50, %v1945_v57 }
 0xc2b   : > { %v1956_v61 = vsel %vm1955_vm1, %v1950_v58, %v1954_v60 }
 0xc2c   : > { %v1958_v63 = vsel %vm1612_vm5, %v1956_v61, 0.0  ;;  %v1961_v0 = vmul.f32 %v1956_v61, %v3966_v16 }
 0xc2d   : > { %1959 = vadd.xlane.f32.xlu1 %v1958_v63 }
 0xc2e   : > { %v1962_v52 = vsel %vm1612_vm5, %v1961_v0, 0.0  ;;  %vm2044_vm5 = vcmask 257024  }
 0xc2f   : > { %1963 = vadd.xlane.f32.xlu0 %v1962_v52 }
 0xc9e   : > { %v2398_v9 = vpop.xlane.xlu0 %2397 }
 0xc9f   : > { %3217 = vrcp.f32 %v2398_v9 }
 0xca2   : > { %v2402_v51 = vpop.xlane.xlu0 %2401 }
 0xca3   : > { %v2897_v1 = vadd.f32 -1.0, %v2402_v51 }
 0xcac   : > { %v3218_v2 = vpop.eup %3217 }
 0xcad   : > { %v2405_v3 = vmul.f32 %v3218_v2, %v2897_v1 }
 0xcaf   : > { %v2406_v4 = vsub.f32 %v3961_v13, %v2405_v3 }
 0xcb1   : > { %v2407_v5 = vmax.f32 %v2406_v4, 0.0 }
 0xcb3   : > { %3045 = vmatmul.mubr.msk.f32.vlgmr.msra.gmra.mxu1 %vm1730_vm6, %v2407_v5 }
 0xcb6   : > { %v1960_v11 = vpop.xlane.xlu1 %1959 }
 0xcb7   : > { %3219 = vrcp.f32 %v1960_v11 }
 0xcb8   : > { %v1964_v12 = vpop.xlane.xlu0 %1963 }
 0xcb9   : > { %v2879_v48 = vadd.f32 -1.0, %v1964_v12 }
 0xcc4   : > { %v3220_v6 = vpop.eup %3219 }
 0xcc5   : > { %v1967_v14 = vmul.f32 %v3220_v6, %v2879_v48 }
 0xcc7   : > { %v1968_v15 = vsub.f32 %v3966_v16, %v1967_v14 }
 0xcc9   : > { %v1969_v62 = vmax.f32 %v1968_v15, 0.0 }
 0xccb   : > { %3038 = vmatmul.mubr.msk.f32.vlgmr.msra.gmra.mxu0 %vm1730_vm6, %v1969_v62 }
 0xccc   : > { %3049 = vmatprep.mubr.msk.f32.mxu0 %vm3544_vm2, %v3541_v7 }
 0xd73   : > { %v2477_v17 = vpop.f32.mrf.mxu1 }
 0xd74   : > { %v2481_v13 = vmul.f32 %v2477_v17, %v2477_v17 }
 0xd75   : > { %v3046_v18 = vpop.f32.mrf.mxu1 }
 0xd76   : > { %v2482_v19 = vsel %vm2044_vm5, %v2481_v13, 0.0 }
 0xd77   : > { %2483 = vadd.xlane.f32.xlu1 %v2482_v19 }
 0xd88   : > { %2578 = vperm.xlu1 %3175, %v2901_v20  }
 0xd8b   : > { %v2039_v28 = vpop.f32.mrf.mxu0 }
 0xd8c   : > { %v2043_v22 = vmul.f32 %v2039_v28, %v2039_v28 }
 0xd8d   : > { %v3039_v29 = vpop.f32.mrf.mxu0 }
 0xd8e   : > { %v2045_v30 = vsel %vm2044_vm5, %v2043_v22, 0.0 }
 0xd8f   : > { %2046 = vadd.xlane.f32.xlu0 %v2045_v30 }
 0xe00   : > { %v2484_v16 = vpop.xlane.xlu1 %2483 }
 0xe01   : > { %3221 = vrsqrt.f32 %v2484_v16  ;;  %vm2487_vm6 = vcmp.eq.f32.partialorder %v2484_v16, inf  ;;  %v2490_v21 = vand.u32 2147483648, %v2484_v16  ;;  %vm2489_vm3 = vcmp.eq.f32.partialorder %v2484_v16, 0.0 }
 0xe04   : > { %v2579_v39 = vpop.permute.xlu1 %2578 }
 0xe0e   : > { %v3222_v32 = vpop.eup %3221 }
 0xe0f   : > { %v2486_v33 = vmul.f32 %v3222_v32, %v2484_v16 }
 0xe11   : > { %v2488_v23 = vsel %vm2487_vm6, %v2484_v16, %v2486_v33 }
 0xe12   : > { %v2491_v10 = vsel %vm2489_vm3, %v2490_v21, %v2488_v23 }
 0xe13   : > { %v2492_v34 = vadd.f32 1e-10, %v2491_v10 }
 0xe15   : > { %3223 = vrcp.f32 %v2492_v34 }
 0xe18   : > { %v2047_v24 = vpop.xlane.xlu0 %2046 }
 0xe19   : > { %3225 = vrsqrt.f32 %v2047_v24  ;;  %vm2050_vm4 = vcmp.eq.f32.partialorder %v2047_v24, inf  ;;  %v2053_v41 = vand.u32 2147483648, %v2047_v24  ;;  %vm2052_vm7 = vcmp.eq.f32.partialorder %v2047_v24, 0.0 }
 0xe22   : > { %v3224_v37 = vpop.eup %3223 }
 0xe23   : > { %v2494_v38 = vmul.f32 %v3224_v37, %v2477_v17 }
 0xe25   : > { %3048 = vmatpush3.xpose.msk.msra.mxu0 %vm838_vm0, %v2494_v38 }
 0xe26   : > { %v3226_v40 = vpop.eup %3225 }
 0xe27   : > { %v2049_v25 = vmul.f32 %v3226_v40, %v2047_v24 }
 0xe29   : > { %v2051_v47 = vsel %vm2050_vm4, %v2047_v24, %v2049_v25 }
 0xe2a   : > { %v2054_v49 = vsel %vm2052_vm7, %v2053_v41, %v2051_v47 }
 0xe2b   : > { %v2055_v53 = vadd.f32 1e-10, %v2054_v49 }
 0xe2d   : > { %3227 = vrcp.f32 %v2055_v53 }
 0xe3a   : > { %v3228_v35 = vpop.eup %3227 }
 0xe3b   : > { %v2057_v31 = vmul.f32 %v3228_v35, %v2039_v28 }
 0xe3d   : > { %3050 = vmatmul.mubr.msk.f32.vlgmr.msra.gmra.mxu0 %vm838_vm0, %v2057_v31  ;;  %vm2586_vm0 = vcmp.eq.s32.totalorder %v3948_v8, %v4159_v59 }
 0xe3e   : > { %v2902_v52 = vsel %vm2586_vm0, 1.0, %v3541_v7 }
 0xefd   : > { %v2568_v54 = vpop.f32.mrf.mxu0 }
 0xefe   : > { %v2581_v26 = vmul.f32 %v2579_v39, %v2568_v54 }
 0xeff   : > { %v3051_v27 = vpop.f32.mrf.mxu0 }
 0xf00   : > { %v2593_v42 = vsel %vm2582_vm8, %v2581_v26, -inf  ;;  %2583 = vst.msk [vmem:[#allocation19] sm:$0xf] %vm2582_vm8, %v2581_v26  ;;  %v2589_v51 = vmul.f32 %v2902_v52, %v2581_v26 }
 0xf01   : > { %2594 = vmax.xlane.f32.xlu0 %v2593_v42  ;;  %v2611_v46 = vrot.slane %v2593_v42, 4 }
 0xf02   : > { %v2590_v2 = vsel %vm2582_vm8, %v2589_v51, 0.0 }
 0xf03   : > { %v2612_v43 = vmax.f32 %v2593_v42, %v2611_v46  ;;  %v2605_v5 = vrot.slane %v2590_v2, 4 }
 0xf05   : > { %v2613_v36 = vrot.slane %v2612_v43, 2  ;;  %v2606_v12 = vadd.f32 %v2605_v5, %v2590_v2 }
 0xf07   : > { %v2614_v44 = vmax.f32 %v2612_v43, %v2613_v36  ;;  %v2607_v48 = vrot.slane %v2606_v12, 2 }
 0xf09   : > { %v2615_v55 = vrot.slane %v2614_v44, 1  ;;  %v2608_v14 = vadd.f32 %v2607_v48, %v2606_v12 }
 0xf0b   : > { %v2616_v50 = vmax.f32 %v2614_v44, %v2615_v55  ;;  %v2609_v62 = vrot.slane %v2608_v14, 1 }
 0xf0d   : > { %v2617_v57 = vsub.f32 %v2581_v26, %v2616_v50  ;;  %v2610_v17 = vadd.f32 %v2609_v62, %v2608_v14 }
 0xf0f   : > { %v2618_v45 = vmul.f32 1.442695, %v2617_v57 }
 0xf11   : > { %3229 = vpow2.f32 %v2618_v45 }
 0xf1e   : > { %v3230_v56 = vpop.eup %3229 }
 0xf1f   : > { %v2620_v58 = vsel %vm2582_vm8, %v3230_v56, 0.0 }
 0xf20   : > { %v2621_v60 = vrot.slane %v2620_v58, 4 }
 0xf22   : > { %v2622_v61 = vadd.f32 %v2621_v60, %v2620_v58 }
 0xf24   : > { %v2623_v63 = vrot.slane %v2622_v61, 2 }
 0xf26   : > { %v2624_v0 = vadd.f32 %v2623_v63, %v2622_v61 }
 0xf28   : > { %v2625_v9 = vrot.slane %v2624_v0, 1 }
 0xf2a   : > { %v2626_v1 = vadd.f32 %v2625_v9, %v2624_v0 }
 0xf2c   : > { %3231 = vlog2.f32 %v2626_v1 }
 0xf39   : > { %v3232_v6 = vpop.eup %3231 }
 0xf3a   : > { %v2628_v15 = vmul.f32 0.6931472, %v3232_v6 }
 0xf3c   : > { %v2629_v59 = vadd.f32 %v2628_v15, %v2616_v50 }
 0xf3e   : > { %v2639_v13 = vsub.f32 %v2629_v59, %v2610_v17 }
 0xf40   : > { %v2641_v18 = vsel %vm2640_vm9, %v2639_v13, 0.0 }
 0xf8a   : > { %v2595_v3 = vpop.xlane.xlu0 %2594 }
 0xf8b   : > { %v2596_v4 = vsub.f32 %v2581_v26, %v2595_v3 }
 0xf8d   : > { %v2597_v11 = vmul.f32 1.442695, %v2596_v4 }
 0xf8f   : > { %3233 = vpow2.f32 %v2597_v11 }
 0xf9c   : > { %v3234_v8 = vpop.eup %3233 }
 0xf9d   : > { %v2599_v7 = vsel %vm2582_vm8, %v3234_v8, 0.0 }
 0xf9e   : > { %2600 = vadd.xlane.f32.xlu0 %v2599_v7 }
 0xfa2   : > { %2591 = vadd.xlane.f32.xlu0 %v2590_v2 }
 0xfa6   : > { %2642 = vadd.xlane.f32.xlu0 %v2641_v18 }
0x1027   : > { %v2601_v19 = vpop.xlane.xlu0 %2600 }
0x1028   : > { %3235 = vlog2.f32 %v2601_v19 }
0x102b   : > { %v2592_v29 = vpop.xlane.xlu0 %2591 }
0x102f   : > { %v2643_v24 = vpop.xlane.xlu0 %2642 }
0x1035   : > { %v3236_v20 = vpop.eup %3235 }
0x1036   : > { %v2603_v28 = vmul.f32 0.6931472, %v3236_v20 }
0x1038   : > { %v2604_v22 = vadd.f32 %v2603_v28, %v2595_v3 }
0x103a   : > { %v2630_v30 = vsub.f32 %v2604_v22, %v2592_v29 }
0x103c   : > { %v2632_v16 = vsel %vm2631_vm10, %v2630_v30, 0.0 }
0x103d   : > { %v2633_v32 = vrot.slane %v2632_v16, 4 }
0x103f   : > { %v2634_v33 = vadd.f32 %v2633_v32, %v2632_v16 }
0x1041   : > { %v2635_v21 = vrot.slane %v2634_v33, 2 }
0x1043   : > { %v2636_v23 = vadd.f32 %v2635_v21, %v2634_v33 }
0x1045   : > { %v2637_v10 = vrot.slane %v2636_v23, 1 }
0x1047   : > { %v2638_v34 = vadd.f32 %v2637_v10, %v2636_v23 }
0x1049   : > { %v2644_v37 = vadd.f32 %v2643_v24, %v2638_v34 }
0x104b   : > { %v2645_v38 = vmul.f32 0.5, %v2644_v37 }
0x104d   : > { %v2646_v40 = vmul.f32 0.25, %v2645_v38 }
0x104f   : > { %2648 = vst.msk [vmem:[#allocation20] sm:$0x1] %vm2647_vm11, %v2646_v40 }
0x1050 PF: > { %p3133_p2 = scmp.eq.s32.totalorder %s3676_s5, 3  ;;  %s3545_s27 = smov [#allocation19]  }
0x1051   : > { %s2656_s28 = sshll.u32 %s3545_s27, 4  ;;  %s3546_s0 = smov [#allocation20]   ;;  %s2657_s28 = int_to_ptr.vmem [resolvable:$true] %s2656_s28 }
0x1052   : > { %s2667_s2 = sshll.u32 %s3546_s0, 4  ;;  %s3445_s21 = scalar_lea.vmem %s2657_s28, 64  ;;  %s2668_s2 = int_to_ptr.vmem [resolvable:$true] %s2667_s2 }
0x1053   : > { %p3446_p3 = scmp.ne.s32.totalorder %s2657_s28, %s3445_s21  ;;  %p3452_p1 = scmp.lt.s32.totalorder %s2657_s28, %s2657_s28 }
0x1054   : > { %p3453_p4 = scmp.lt.s32.totalorder %s3445_s21, %s3445_s21 }
0x1055   : > { %p3447_p6 = pnand %p3446_p3, %p3133_p2 }
0x1056   : > { %p3454_p7 = por %p3453_p4, %p3452_p1 }
0x1057   : > { %p3448_p0 = pneg %p3447_p6 }
0x1059   : > { %p3455_p5 = pnand %p3454_p7, %p3448_p0 }
0x105b   : > { %3458 = shalt.err (!%p3455_p5)
}
0x105c   : > { %3085 = dma.vmem_to_hbm [thread:$0]  (%p3133_p2), %s2657_s28, 64, %s4253_s22, [#allocation7]  }
0x105d   : > { %s3469_s25 = scalar_lea.vmem %s2668_s2, 16  ;;  %s3475_s1 = scalar_lea.vmem %s2668_s2, 32 }
0x105e   : > { %p3470_p8 = scmp.ne.s32.totalorder %s2668_s2, %s3469_s25  ;;  %p3476_p11 = scmp.lt.s32.totalorder %s2668_s2, %s2668_s2 }
0x105f   : > { %p3477_p12 = scmp.lt.s32.totalorder %s3475_s1, %s3469_s25 }
0x1060   : > { %p3471_p9 = pnand %p3470_p8, %p3133_p2 }
0x1061   : > { %p3478_p13 = por %p3477_p12, %p3476_p11 }
0x1062   : > { %p3472_p10 = pneg %p3471_p9 }
0x1064   : > { %p3479_p3 = pnand %p3478_p13, %p3472_p10 }
0x1066   : > { %3482 = shalt.err (!%p3479_p3)
}
0x1067   : > { %s4290_s30 = sld [smem:[#allocation37_spill]] }
0x106d   : > { %3087 = dma.vmem_to_hbm [thread:$0]  (%p3133_p2), %s2668_s2, 16, %s4290_s30, [#allocation21]  }
0x106e   : > { %3518 = dma.done.wait (%p3133_p2), [#allocation7], 64  }
0x106f   : > { %3520 = vsyncadd (%p3133_p2), [#allocation7], 4294967232 }
0x1070   : > { %3522 = dma.done.wait (%p3133_p2), [#allocation21], 16  }
0x1071   : > { %3524 = vsyncadd (%p3133_p2), [#allocation21], 4294967280 }
0x1072 PF: > { %s43_s24 = sadd.s32 1, %s3527_s24  }
0x1073   : > { %p40_p6 = scmp.ge.s32.totalorder %s43_s24, 6  }
0x1075   :  { %42 = sbr.rel (!%p40_p6) target bundleno = 17 (0x11), region = 187 }
0x107a   :  { %2684 = vsyncpa [#allocation6], 1 }
0x107b   :  { %2686 = vsyncpa [#allocation6 + $0x1], 1 }
0x107c   :  { %2687 = vsyncpa [#allocation9], 1 }
0x107d   :  { %2688 = vsyncpa [#allocation12], 1 }
0x107e   :  { %2689 = vsyncpa [#allocation15], 1 }
0x107f   :  { %2690 = vsyncpa [#allocation18], 1 }
0x1080   :  { %2691 = vsyncpa [#allocation7], 1 }
0x1081   :  { %2693 = vsyncpa [#allocation7 + $0x1], 1 }
0x1082   :  { %2694 = vsyncpa [#allocation21], 1 }

</bundles_post_ra>
